<compile_context>
chip_gen: v7x
topology: tpu7x:2x2x1
jax: 0.10.0
libtpu: 0.0.40
codegen_flags: <defaults>
</compile_context>

<pallas_src>
import functools

import jax
import jax.numpy as jnp
from jax import lax
from jax.experimental import pallas as pl
from jax.experimental.pallas import tpu as pltpu

# Architecture constants (reference operates on 3x16x16 images).
IMG_C, IMG_H, IMG_W = 3, 16, 16
CODE_DIM = 256
BODY_PAD = 128      # body_infos (2 features) zero-padded to a full 128-lane tile
BT = 16             # batch tile: sublane-aligned for both f32 and packed bf16


# ----------------------------------------------------------------------------
# Fused forward kernel
# ----------------------------------------------------------------------------
def _autoencoder_kernel(*refs, normalize_emb, has_body):
    if has_body:
        (x_ref, m1, b1, m2, b2, we, be, wd, bd, m3, b3, m4, b4,
         body_ref, wb, o_ref) = refs
    else:
        (x_ref, m1, b1, m2, b2, we, be, wd, bd, m3, b3, m4, b4, o_ref) = refs
        body_ref = wb = None

    def dense(a_bf16, w_ref, b_ref, act):
        acc = jnp.dot(a_bf16, w_ref[...], preferred_element_type=jnp.float32)
        acc = acc + b_ref[...]                      # f32 epilogue (v5e-safe)
        if act == "relu":
            acc = jnp.maximum(acc, 0.0)
        elif act == "sigmoid":
            acc = 0.5 * (jnp.tanh(0.5 * acc) + 1.0)  # stable sigmoid via EUP tanh
        return acc

    # ---- encoder: conv1 -> conv2 -> fc (all as lane-dense GEMMs) ----
    h = dense(x_ref[...], m1, b1, "relu").astype(jnp.bfloat16)      # (BT, 512)
    h = dense(h, m2, b2, "relu").astype(jnp.bfloat16)               # (BT, 256)
    code = dense(h, we, be, "none")                                 # (BT, 256) f32
    # TODO(synk): encoder dropout(p=0.2) is eval-mode identity here.

    if normalize_emb:   # torch.nn.functional.normalize(code, p=2, dim=1)
        ss = jnp.sum(code * code, axis=1, keepdims=True)
        code = code * lax.rsqrt(jnp.maximum(ss, 1e-24))

    code = code.astype(jnp.bfloat16)

    # ---- decoder: fc -> deconv1 -> deconv2 ----
    acc = jnp.dot(code, wd[...], preferred_element_type=jnp.float32)
    if has_body:
        # cat([code, body], 1) @ W  ==  code @ W_code + body @ W_body (split weights)
        acc = acc + jnp.dot(body_ref[...], wb[...], preferred_element_type=jnp.float32)
    g = jnp.maximum(acc + bd[...], 0.0).astype(jnp.bfloat16)        # (BT, 256)
    g = dense(g, m3, b3, "relu").astype(jnp.bfloat16)               # (BT, 512)
    out = dense(g, m4, b4, "sigmoid")                               # (BT, 768)
    o_ref[...] = out.astype(o_ref.dtype)


# ----------------------------------------------------------------------------
# One-time parameter preprocessing (outside the hot path)
# ----------------------------------------------------------------------------
def _conv_matrix(w_oihw, h, w, stride, pad):
    """Exact dense matrix A of Conv2d(weight=w_oihw, stride, pad) acting on
    NCHW-flattened vectors:  flat_out = flat_in @ A  (flatten order (c, h, w),
    matching torch .view(B, -1)).  Built by pushing basis vectors through the conv."""
    cout, cin, kh, kw = w_oihw.shape
    basis = jnp.eye(cin * h * w, dtype=jnp.float32).reshape(cin * h * w, cin, h, w)
    out = lax.conv_general_dilated(
        basis, w_oihw.astype(jnp.float32),
        window_strides=(stride, stride), padding=[(pad, pad), (pad, pad)],
        dimension_numbers=("NCHW", "OIHW", "NCHW"))
    return out.reshape(cin * h * w, -1)


def _deconv_matrix(w_t, h_in, w_in, stride, pad):
    """Exact dense matrix of ConvTranspose2d with PyTorch weight (Cin, Cout, kH, kW).
    ConvTranspose2d is the adjoint of Conv2d(in=Cout, out=Cin, k, s, p) whose OIHW
    weight is the same tensor, so the matrix is that conv's matrix transposed
    (this also takes care of the 180-degree kernel flip / channel-axis swap)."""
    cin, cout, kh, kw = w_t.shape
    h_out = (h_in - 1) * stride - 2 * pad + kh
    w_out = (w_in - 1) * stride - 2 * pad + kw
    a = _conv_matrix(w_t, h_out, w_out, stride, pad)   # (h_out*w_out*cout, h_in*w_in*cin)
    return a.T


def init_params(key, add_body_infos=False, body_dim=2):
    """Synthetic weights in PyTorch layouts:
    Conv2d (Cout,Cin,kH,kW), ConvTranspose2d (Cin,Cout,kH,kW), Linear (out,in)."""
    ks = jax.random.split(key, 6)

    def mat(k, shape, fan_in):
        return jax.random.normal(k, shape, jnp.float32) / jnp.sqrt(float(fan_in))

    n_in = CODE_DIM + (body_dim if add_body_infos else 0)
    p = {}
    p["e_c1_w"] = mat(ks[0], (8, 3, 3, 3), 3 * 9);     p["e_c1_b"] = jnp.zeros((8,), jnp.float32)
    p["e_c2_w"] = mat(ks[1], (16, 8, 3, 3), 8 * 9);    p["e_c2_b"] = jnp.zeros((16,), jnp.float32)
    p["e_fc_w"] = mat(ks[2], (256, 256), 256);         p["e_fc_b"] = jnp.zeros((256,), jnp.float32)
    p["d_fc_w"] = mat(ks[3], (256, n_in), n_in);       p["d_fc_b"] = jnp.zeros((256,), jnp.float32)
    p["d_t1_w"] = mat(ks[4], (16, 8, 4, 4), 16 * 16);  p["d_t1_b"] = jnp.zeros((8,), jnp.float32)
    p["d_t2_w"] = mat(ks[5], (8, 3, 4, 4), 8 * 16);    p["d_t2_b"] = jnp.zeros((3,), jnp.float32)
    return p


def prepare_fused_params(params, add_body_infos=False, body_dim=2):
    """Lower convs/deconvs to dense operators, transpose Linear weights to (in,out),
    cast MXU operands to bf16, broadcast biases to the flat NCHW layout (f32)."""
    f = {}

    def put(mk, bk, m, b, spatial):
        f[mk] = m.astype(jnp.bfloat16)
        f[bk] = jnp.repeat(b, spatial).reshape(1, -1).astype(jnp.float32)

    put("m1", "b1", _conv_matrix(params["e_c1_w"], IMG_H, IMG_W, 2, 1), params["e_c1_b"], 8 * 8)
    put("m2", "b2", _conv_matrix(params["e_c2_w"], 8, 8, 2, 1), params["e_c2_b"], 4 * 4)
    f["we"] = params["e_fc_w"].T.astype(jnp.bfloat16)          # torch Linear: y = x @ W.T + b
    f["be"] = params["e_fc_b"].reshape(1, -1).astype(jnp.float32)
    f["wd"] = params["d_fc_w"][:, :CODE_DIM].T.astype(jnp.bfloat16)
    f["bd"] = params["d_fc_b"].reshape(1, -1).astype(jnp.float32)
    if add_body_infos:
        wb = jnp.zeros((BODY_PAD, CODE_DIM), jnp.float32)
        wb = wb.at[:body_dim].set(params["d_fc_w"][:, CODE_DIM:CODE_DIM + body_dim].T)
        f["wb"] = wb.astype(jnp.bfloat16)
    put("m3", "b3", _deconv_matrix(params["d_t1_w"], 4, 4, 2, 1), params["d_t1_b"], 8 * 8)
    put("m4", "b4", _deconv_matrix(params["d_t2_w"], 8, 8, 2, 1), params["d_t2_b"], 16 * 16)
    return f


# ----------------------------------------------------------------------------
# Forward pass (AutoEncoder.forward) — one fused pallas_call
# ----------------------------------------------------------------------------
def autoencoder_forward(fused, x_nchw, body_infos=None, normalize_emb=False):
    B = x_nchw.shape[0]
    assert x_nchw.shape[1:] == (IMG_C, IMG_H, IMG_W), x_nchw.shape
    in_dim = IMG_C * IMG_H * IMG_W
    b_pad = ((B + BT - 1) // BT) * BT

    x_flat = x_nchw.reshape(B, in_dim).astype(jnp.bfloat16)         # NCHW (c,h,w) flatten
    x_flat = jnp.pad(x_flat, ((0, b_pad - B), (0, 0)))

    has_body = body_infos is not None
    w_names = ["m1", "b1", "m2", "b2", "we", "be", "wd", "bd", "m3", "b3", "m4", "b4"]
    weights = [fused[n] for n in w_names]

    inputs = [x_flat] + weights
    in_specs = [pl.BlockSpec((BT, in_dim), lambda i: (i, 0))]
    in_specs += [pl.BlockSpec(w.shape, lambda i: (0, 0)) for w in weights]  # VMEM-resident
    if has_body:
        assert "wb" in fused, "fused params were built without add_body_infos"
        body = body_infos.astype(jnp.bfloat16)
        body = jnp.pad(body, ((0, b_pad - B), (0, BODY_PAD - body.shape[1])))
        inputs += [body, fused["wb"]]
        in_specs += [pl.BlockSpec((BT, BODY_PAD), lambda i: (i, 0)),
                     pl.BlockSpec(fused["wb"].shape, lambda i: (0, 0))]

    kernel = functools.partial(_autoencoder_kernel,
                               normalize_emb=normalize_emb, has_body=has_body)
    out_flat = pl.pallas_call(
        kernel,
        out_shape=jax.ShapeDtypeStruct((b_pad, in_dim), jnp.float32),
        grid=(b_pad // BT,),
        in_specs=in_specs,
        out_specs=pl.BlockSpec((BT, in_dim), lambda i: (i, 0)),     # lane-dense (768) store
        compiler_params=pltpu.CompilerParams(
            dimension_semantics=("parallel",),          # shard batch tiles across v7x's 2 TCs
            vmem_limit_bytes=32 * 1024 * 1024),
    )(*inputs)

    return out_flat[:B].reshape(B, IMG_C, IMG_H, IMG_W)             # NCHW, like the reference


# ----------------------------------------------------------------------------
# Pure-JAX f32 reference (for correctness check only; not the hot path)
# ----------------------------------------------------------------------------
def reference_forward(params, x, body_infos=None, normalize_emb=False):
    conv = lambda v, w, s, p: lax.conv_general_dilated(
        v, w, (s, s), [(p, p), (p, p)], dimension_numbers=("NCHW", "OIHW", "NCHW"))
    relu = lambda v: jnp.maximum(v, 0.0)
    b = x.shape[0]
    h = relu(conv(x, params["e_c1_w"], 2, 1) + params["e_c1_b"][None, :, None, None])
    h = relu(conv(h, params["e_c2_w"], 2, 1) + params["e_c2_b"][None, :, None, None])
    code = h.reshape(b, -1) @ params["e_fc_w"].T + params["e_fc_b"]
    if normalize_emb:
        code = code / jnp.maximum(jnp.linalg.norm(code, axis=1, keepdims=True), 1e-12)
    if body_infos is not None:
        code = jnp.concatenate([code, body_infos], axis=1)
    g = relu(code @ params["d_fc_w"].T + params["d_fc_b"]).reshape(b, 16, 4, 4)

    def deconv(v, w_t, s, p, hw_out):                   # ConvTranspose2d == adjoint of conv
        f = lambda z: conv(z, w_t, s, p)
        zeros = jnp.zeros((b, w_t.shape[1], hw_out, hw_out), v.dtype)
        return jax.vjp(f, zeros)[1](v)[0]

    g = relu(deconv(g, params["d_t1_w"], 2, 1, 8) + params["d_t1_b"][None, :, None, None])
    out = deconv(g, params["d_t2_w"], 2, 1, 16) + params["d_t2_b"][None, :, None, None]
    return jax.nn.sigmoid(out)


# ----------------------------------------------------------------------------
if __name__ == "__main__":
    key = jax.random.PRNGKey(0)
    k_param, k_x = jax.random.split(key)

    params = init_params(k_param)                 # PyTorch-layout weights
    fused = prepare_fused_params(params)          # one-time lowering to dense operators
    x = jax.random.uniform(k_x, (2, IMG_C, IMG_H, IMG_W), jnp.float32)   # NCHW like torch

    fwd = jax.jit(functools.partial(autoencoder_forward, normalize_emb=False))
    out = jax.block_until_ready(fwd(fused, x))

    assert out.shape == (2, IMG_C, IMG_H, IMG_W), out.shape
    assert out.dtype == jnp.float32
    assert bool(jnp.all(jnp.isfinite(out)))

    ref = reference_forward(params, x)
    err = float(jnp.max(jnp.abs(out - ref)))
    assert err < 3e-2, f"mismatch vs f32 reference: {err}"

    print("KERNEL_OK")
</pallas_src>

<mosaic_0001>
module attributes {stable_mosaic.version = 11 : i64} {
  func.func @_autoencoder_kernel(%arg0: i32, %arg1: memref<16x768xbf16, #tpu.memory_space<vmem>>, %arg2: memref<768x512xbf16, #tpu.memory_space<vmem>>, %arg3: memref<1x512xf32, #tpu.memory_space<vmem>>, %arg4: memref<512x256xbf16, #tpu.memory_space<vmem>>, %arg5: memref<1x256xf32, #tpu.memory_space<vmem>>, %arg6: memref<256x256xbf16, #tpu.memory_space<vmem>>, %arg7: memref<1x256xf32, #tpu.memory_space<vmem>>, %arg8: memref<256x256xbf16, #tpu.memory_space<vmem>>, %arg9: memref<1x256xf32, #tpu.memory_space<vmem>>, %arg10: memref<256x512xbf16, #tpu.memory_space<vmem>>, %arg11: memref<1x512xf32, #tpu.memory_space<vmem>>, %arg12: memref<512x768xbf16, #tpu.memory_space<vmem>>, %arg13: memref<1x768xf32, #tpu.memory_space<vmem>>, %arg14: memref<16x768xf32, #tpu.memory_space<vmem>>) attributes {dimension_semantics = [#tpu.dimension_semantics<parallel>], iteration_bounds = array<i64: 1>, scalar_prefetch = 0 : i64, scratch_operands = 0 : i64, tpu.core_type = #tpu.core_type<tc>, window_params = [{transform_indices = @transform_0, window_bounds = array<i64: 16, 768>}, {pipeline_mode = #tpu.pipeline_mode<synchronous>, transform_indices = @transform_1, window_bounds = array<i64: 768, 512>}, {pipeline_mode = #tpu.pipeline_mode<synchronous>, transform_indices = @transform_2, window_bounds = array<i64: 1, 512>}, {pipeline_mode = #tpu.pipeline_mode<synchronous>, transform_indices = @transform_3, window_bounds = array<i64: 512, 256>}, {pipeline_mode = #tpu.pipeline_mode<synchronous>, transform_indices = @transform_4, window_bounds = array<i64: 1, 256>}, {pipeline_mode = #tpu.pipeline_mode<synchronous>, transform_indices = @transform_5, window_bounds = array<i64: 256, 256>}, {pipeline_mode = #tpu.pipeline_mode<synchronous>, transform_indices = @transform_6, window_bounds = array<i64: 1, 256>}, {pipeline_mode = #tpu.pipeline_mode<synchronous>, transform_indices = @transform_7, window_bounds = array<i64: 256, 256>}, {pipeline_mode = #tpu.pipeline_mode<synchronous>, transform_indices = @transform_8, window_bounds = array<i64: 1, 256>}, {pipeline_mode = #tpu.pipeline_mode<synchronous>, transform_indices = @transform_9, window_bounds = array<i64: 256, 512>}, {pipeline_mode = #tpu.pipeline_mode<synchronous>, transform_indices = @transform_10, window_bounds = array<i64: 1, 512>}, {pipeline_mode = #tpu.pipeline_mode<synchronous>, transform_indices = @transform_11, window_bounds = array<i64: 512, 768>}, {pipeline_mode = #tpu.pipeline_mode<synchronous>, transform_indices = @transform_12, window_bounds = array<i64: 1, 768>}, {transform_indices = @transform_13, window_bounds = array<i64: 16, 768>}]} {
    %c0 = arith.constant 0 : index
    %c0_0 = arith.constant 0 : index
    %0 = vector.load %arg1[%c0, %c0_0] : memref<16x768xbf16, #tpu.memory_space<vmem>>, vector<16x768xbf16>
    %c0_1 = arith.constant 0 : index
    %c0_2 = arith.constant 0 : index
    %1 = vector.load %arg2[%c0_1, %c0_2] : memref<768x512xbf16, #tpu.memory_space<vmem>>, vector<768x512xbf16>
    %cst = arith.constant dense<0.000000e+00> : vector<16x512xf32>
    %2 = tpu.matmul %0, %1, %cst {dimension_numbers = #tpu.dot_dimension_numbers<[1], [0], [0], [1], [0, 0, 1, 1], [], []>} : vector<16x768xbf16>, vector<768x512xbf16>, vector<16x512xf32> -> vector<16x512xf32>
    %c0_3 = arith.constant 0 : index
    %c0_4 = arith.constant 0 : index
    %3 = vector.load %arg3[%c0_3, %c0_4] : memref<1x512xf32, #tpu.memory_space<vmem>>, vector<1x512xf32>
    %4 = vector.broadcast %3 : vector<1x512xf32> to vector<16x512xf32>
    %5 = arith.addf %2, %4 : vector<16x512xf32>
    %cst_5 = arith.constant 0.000000e+00 : f32
    %6 = vector.broadcast %cst_5 : f32 to vector<16x512xf32>
    %7 = arith.maximumf %5, %6 : vector<16x512xf32>
    %8 = arith.truncf %7 : vector<16x512xf32> to vector<16x512xbf16>
    %c0_6 = arith.constant 0 : index
    %c0_7 = arith.constant 0 : index
    %9 = vector.load %arg4[%c0_6, %c0_7] : memref<512x256xbf16, #tpu.memory_space<vmem>>, vector<512x256xbf16>
    %cst_8 = arith.constant dense<0.000000e+00> : vector<16x256xf32>
    %10 = tpu.matmul %8, %9, %cst_8 {dimension_numbers = #tpu.dot_dimension_numbers<[1], [0], [0], [1], [0, 0, 1, 1], [], []>} : vector<16x512xbf16>, vector<512x256xbf16>, vector<16x256xf32> -> vector<16x256xf32>
    %c0_9 = arith.constant 0 : index
    %c0_10 = arith.constant 0 : index
    %11 = vector.load %arg5[%c0_9, %c0_10] : memref<1x256xf32, #tpu.memory_space<vmem>>, vector<1x256xf32>
    %12 = vector.broadcast %11 : vector<1x256xf32> to vector<16x256xf32>
    %13 = arith.addf %10, %12 : vector<16x256xf32>
    %cst_11 = arith.constant 0.000000e+00 : f32
    %14 = vector.broadcast %cst_11 : f32 to vector<16x256xf32>
    %15 = arith.maximumf %13, %14 : vector<16x256xf32>
    %16 = arith.truncf %15 : vector<16x256xf32> to vector<16x256xbf16>
    %c0_12 = arith.constant 0 : index
    %c0_13 = arith.constant 0 : index
    %17 = vector.load %arg6[%c0_12, %c0_13] : memref<256x256xbf16, #tpu.memory_space<vmem>>, vector<256x256xbf16>
    %cst_14 = arith.constant dense<0.000000e+00> : vector<16x256xf32>
    %18 = tpu.matmul %16, %17, %cst_14 {dimension_numbers = #tpu.dot_dimension_numbers<[1], [0], [0], [1], [0, 0, 1, 1], [], []>} : vector<16x256xbf16>, vector<256x256xbf16>, vector<16x256xf32> -> vector<16x256xf32>
    %c0_15 = arith.constant 0 : index
    %c0_16 = arith.constant 0 : index
    %19 = vector.load %arg7[%c0_15, %c0_16] : memref<1x256xf32, #tpu.memory_space<vmem>>, vector<1x256xf32>
    %20 = vector.broadcast %19 : vector<1x256xf32> to vector<16x256xf32>
    %21 = arith.addf %18, %20 : vector<16x256xf32>
    %22 = arith.truncf %21 : vector<16x256xf32> to vector<16x256xbf16>
    %c0_17 = arith.constant 0 : index
    %c0_18 = arith.constant 0 : index
    %23 = vector.load %arg8[%c0_17, %c0_18] : memref<256x256xbf16, #tpu.memory_space<vmem>>, vector<256x256xbf16>
    %cst_19 = arith.constant dense<0.000000e+00> : vector<16x256xf32>
    %24 = tpu.matmul %22, %23, %cst_19 {dimension_numbers = #tpu.dot_dimension_numbers<[1], [0], [0], [1], [0, 0, 1, 1], [], []>} : vector<16x256xbf16>, vector<256x256xbf16>, vector<16x256xf32> -> vector<16x256xf32>
    %c0_20 = arith.constant 0 : index
    %c0_21 = arith.constant 0 : index
    %25 = vector.load %arg9[%c0_20, %c0_21] : memref<1x256xf32, #tpu.memory_space<vmem>>, vector<1x256xf32>
    %26 = vector.broadcast %25 : vector<1x256xf32> to vector<16x256xf32>
    %27 = arith.addf %24, %26 : vector<16x256xf32>
    %cst_22 = arith.constant 0.000000e+00 : f32
    %28 = vector.broadcast %cst_22 : f32 to vector<16x256xf32>
    %29 = arith.maximumf %27, %28 : vector<16x256xf32>
    %30 = arith.truncf %29 : vector<16x256xf32> to vector<16x256xbf16>
    %c0_23 = arith.constant 0 : index
    %c0_24 = arith.constant 0 : index
    %31 = vector.load %arg10[%c0_23, %c0_24] : memref<256x512xbf16, #tpu.memory_space<vmem>>, vector<256x512xbf16>
    %cst_25 = arith.constant dense<0.000000e+00> : vector<16x512xf32>
    %32 = tpu.matmul %30, %31, %cst_25 {dimension_numbers = #tpu.dot_dimension_numbers<[1], [0], [0], [1], [0, 0, 1, 1], [], []>} : vector<16x256xbf16>, vector<256x512xbf16>, vector<16x512xf32> -> vector<16x512xf32>
    %c0_26 = arith.constant 0 : index
    %c0_27 = arith.constant 0 : index
    %33 = vector.load %arg11[%c0_26, %c0_27] : memref<1x512xf32, #tpu.memory_space<vmem>>, vector<1x512xf32>
    %34 = vector.broadcast %33 : vector<1x512xf32> to vector<16x512xf32>
    %35 = arith.addf %32, %34 : vector<16x512xf32>
    %cst_28 = arith.constant 0.000000e+00 : f32
    %36 = vector.broadcast %cst_28 : f32 to vector<16x512xf32>
    %37 = arith.maximumf %35, %36 : vector<16x512xf32>
    %38 = arith.truncf %37 : vector<16x512xf32> to vector<16x512xbf16>
    %c0_29 = arith.constant 0 : index
    %c0_30 = arith.constant 0 : index
    %39 = vector.load %arg12[%c0_29, %c0_30] : memref<512x768xbf16, #tpu.memory_space<vmem>>, vector<512x768xbf16>
    %cst_31 = arith.constant dense<0.000000e+00> : vector<16x768xf32>
    %40 = tpu.matmul %38, %39, %cst_31 {dimension_numbers = #tpu.dot_dimension_numbers<[1], [0], [0], [1], [0, 0, 1, 1], [], []>} : vector<16x512xbf16>, vector<512x768xbf16>, vector<16x768xf32> -> vector<16x768xf32>
    %c0_32 = arith.constant 0 : index
    %c0_33 = arith.constant 0 : index
    %41 = vector.load %arg13[%c0_32, %c0_33] : memref<1x768xf32, #tpu.memory_space<vmem>>, vector<1x768xf32>
    %42 = vector.broadcast %41 : vector<1x768xf32> to vector<16x768xf32>
    %43 = arith.addf %40, %42 : vector<16x768xf32>
    %cst_34 = arith.constant 5.000000e-01 : f32
    %44 = vector.broadcast %cst_34 : f32 to vector<16x768xf32>
    %45 = arith.mulf %44, %43 : vector<16x768xf32>
    %46 = math.tanh %45 : vector<16x768xf32>
    %cst_35 = arith.constant 1.000000e+00 : f32
    %47 = vector.broadcast %cst_35 : f32 to vector<16x768xf32>
    %48 = arith.addf %46, %47 : vector<16x768xf32>
    %cst_36 = arith.constant 5.000000e-01 : f32
    %49 = vector.broadcast %cst_36 : f32 to vector<16x768xf32>
    %50 = arith.mulf %49, %48 : vector<16x768xf32>
    %c0_37 = arith.constant 0 : index
    %c0_38 = arith.constant 0 : index
    %51 = vector.load %arg14[%c0_37, %c0_38] : memref<16x768xf32, #tpu.memory_space<vmem>>, vector<16x768xf32>
    tpu.vector_store %arg14[%c0_37, %c0_38], %50 {strides = array<i32>} : memref<16x768xf32, #tpu.memory_space<vmem>>, vector<16x768xf32>,
    return
  }
  func.func @transform_0(%arg0: i32) -> (i32, i32) {
    %c0_i32 = arith.constant 0 : i32
    %c0_i32_0 = arith.constant 0 : i32
    return %arg0, %c0_i32 : i32, i32
  }
  func.func @transform_1(%arg0: i32) -> (i32, i32) {
    %c0_i32 = arith.constant 0 : i32
    %c0_i32_0 = arith.constant 0 : i32
    %c0_i32_1 = arith.constant 0 : i32
    return %c0_i32, %c0_i32_0 : i32, i32
  }
  func.func @transform_2(%arg0: i32) -> (i32, i32) {
    %c0_i32 = arith.constant 0 : i32
    %c0_i32_0 = arith.constant 0 : i32
    %c0_i32_1 = arith.constant 0 : i32
    return %c0_i32, %c0_i32_0 : i32, i32
  }
  func.func @transform_3(%arg0: i32) -> (i32, i32) {
    %c0_i32 = arith.constant 0 : i32
    %c0_i32_0 = arith.constant 0 : i32
    %c0_i32_1 = arith.constant 0 : i32
    return %c0_i32, %c0_i32_0 : i32, i32
  }
  func.func @transform_4(%arg0: i32) -> (i32, i32) {
    %c0_i32 = arith.constant 0 : i32
    %c0_i32_0 = arith.constant 0 : i32
    %c0_i32_1 = arith.constant 0 : i32
    return %c0_i32, %c0_i32_0 : i32, i32
  }
  func.func @transform_5(%arg0: i32) -> (i32, i32) {
    %c0_i32 = arith.constant 0 : i32
    %c0_i32_0 = arith.constant 0 : i32
    %c0_i32_1 = arith.constant 0 : i32
    return %c0_i32, %c0_i32_0 : i32, i32
  }
  func.func @transform_6(%arg0: i32) -> (i32, i32) {
    %c0_i32 = arith.constant 0 : i32
    %c0_i32_0 = arith.constant 0 : i32
    %c0_i32_1 = arith.constant 0 : i32
    return %c0_i32, %c0_i32_0 : i32, i32
  }
  func.func @transform_7(%arg0: i32) -> (i32, i32) {
    %c0_i32 = arith.constant 0 : i32
    %c0_i32_0 = arith.constant 0 : i32
    %c0_i32_1 = arith.constant 0 : i32
    return %c0_i32, %c0_i32_0 : i32, i32
  }
  func.func @transform_8(%arg0: i32) -> (i32, i32) {
    %c0_i32 = arith.constant 0 : i32
    %c0_i32_0 = arith.constant 0 : i32
    %c0_i32_1 = arith.constant 0 : i32
    return %c0_i32, %c0_i32_0 : i32, i32
  }
  func.func @transform_9(%arg0: i32) -> (i32, i32) {
    %c0_i32 = arith.constant 0 : i32
    %c0_i32_0 = arith.constant 0 : i32
    %c0_i32_1 = arith.constant 0 : i32
    return %c0_i32, %c0_i32_0 : i32, i32
  }
  func.func @transform_10(%arg0: i32) -> (i32, i32) {
    %c0_i32 = arith.constant 0 : i32
    %c0_i32_0 = arith.constant 0 : i32
    %c0_i32_1 = arith.constant 0 : i32
    return %c0_i32, %c0_i32_0 : i32, i32
  }
  func.func @transform_11(%arg0: i32) -> (i32, i32) {
    %c0_i32 = arith.constant 0 : i32
    %c0_i32_0 = arith.constant 0 : i32
    %c0_i32_1 = arith.constant 0 : i32
    return %c0_i32, %c0_i32_0 : i32, i32
  }
  func.func @transform_12(%arg0: i32) -> (i32, i32) {
    %c0_i32 = arith.constant 0 : i32
    %c0_i32_0 = arith.constant 0 : i32
    %c0_i32_1 = arith.constant 0 : i32
    return %c0_i32, %c0_i32_0 : i32, i32
  }
  func.func @transform_13(%arg0: i32) -> (i32, i32) {
    %c0_i32 = arith.constant 0 : i32
    %c0_i32_0 = arith.constant 0 : i32
    return %arg0, %c0_i32 : i32, i32
  }
}

</mosaic_0001>

<bundles_post_ra>
// kernel: autoencoder_forward.1
= control target key start
LH: loop header
LB: loop body
LE: loop exit
PB: predicated region body
PF: predicated region fallthrough
CT: control target
= control target key end

     0   :  { %18 = vsyncpa [#allocation3], 0  ;;  %s6660_s0 = inlined_call_operand.vmem [shape: bf16[16,768], index: 0, kind: input, shape index: {}]   ;;  %s6661_s1 = inlined_call_operand.hbm [shape: bf16[768,512], index: 1, kind: input, shape index: {}]   ;;  %s6662_s2 = inlined_call_operand.vmem [shape: f32[1,512], index: 2, kind: input, shape index: {}]   ;;  %s6663_s3 = inlined_call_operand.hbm [shape: bf16[512,256], index: 3, kind: input, shape index: {}]   ;;  %s6664_s4 = inlined_call_operand.vmem [shape: f32[1,256], index: 4, kind: input, shape index: {}]   ;;  %s6665_s5 = inlined_call_operand.vmem [shape: bf16[256,256], index: 5, kind: input, shape index: {}]   ;;  %s6666_s6 = inlined_call_operand.vmem [shape: f32[1,256], index: 6, kind: input, shape index: {}]   ;;  %s6667_s7 = inlined_call_operand.hbm [shape: bf16[256,256], index: 7, kind: input, shape index: {}]   ;;  %s6668_s8 = inlined_call_operand.vmem [shape: f32[1,256], index: 8, kind: input, shape index: {}]   ;;  %s6669_s9 = inlined_call_operand.hbm [shape: bf16[256,512], index: 9, kind: input, shape index: {}]   ;;  %s6670_s10 = inlined_call_operand.vmem [shape: f32[1,512], index: 10, kind: input, shape index: {}]   ;;  %s6671_s11 = inlined_call_operand.hbm [shape: bf16[512,768], index: 11, kind: input, shape index: {}]   ;;  %s6672_s12 = inlined_call_operand.vmem [shape: f32[1,768], index: 12, kind: input, shape index: {}]   ;;  %s6673_s13 = inlined_call_operand.vmem [shape: f32[16,768], index: 13, kind: output, shape index: {}]  }
   0x1   :  { %19 = vsyncpa [#allocation5], 0 }
   0x2   :  { %20 = vsyncpa [#allocation8], 0  ;;  %s6259_s25 = smov [#allocation4]   ;;  %s6143_s29 = scalar_lea.hbm %s6663_s3, 8192 }
   0x3   :  { %s42_s26 = sshll.u32 %s6259_s25, 4  ;;  %p6144_p0 = scmp.ne.s32.totalorder %s6663_s3, %s6143_s29  ;;  %s43_s26 = int_to_ptr.vmem [resolvable:$true] %s42_s26 }
   0x4   :  { %p6147_p1 = scmp.lt.u32.totalorder %s6143_s29, %s6663_s3 }
   0x6   :  { %p6149_p2 = pnand %p6147_p1, %p6144_p0 }
   0x8   :  { %6152 = shalt.err (!%p6149_p2)
}
   0x9   :  { %s6153_s17 = scalar_lea.vmem %s43_s26, 8192  ;;  %p6158_p4 = scmp.lt.s32.totalorder %s43_s26, %s43_s26 }
   0xa   :  { %p6154_p3 = scmp.ne.s32.totalorder %s43_s26, %s6153_s17  ;;  %p6159_p5 = scmp.lt.s32.totalorder %s6153_s17, %s6153_s17 }
   0xc   :  { %p6160_p6 = por %p6159_p5, %p6158_p4 }
   0xe   :  { %p6161_p7 = pnand %p6160_p6, %p6154_p3 }
  0x10   :  { %6164 = shalt.err (!%p6161_p7)
}
  0x11   :  { %s6260_s18 = smov 128   ;;  %s6261_s19 = smov 8  }
  0x12   :  { %48 = dma.hbm_to_vmem [thread:$0]  %s6663_s3, 8192, %s43_s26, [#allocation5], %s6260_s18, %s6260_s18, %s6261_s19  }
  0x13   :  { %s6262_s22 = smov [#allocation7]   ;;  %s6263_s24 = smov [#allocation2]  }
  0x14   :  { %s74_s23 = sshll.u32 %s6262_s22, 4  ;;  %s28_s25 = sshll.u32 %s6263_s24, 4  ;;  %s75_s23 = int_to_ptr.vmem [resolvable:$true] %s74_s23  ;;  %s29_s25 = int_to_ptr.vmem [resolvable:$true] %s28_s25 }
  0x15   :  { %s6165_s29 = scalar_lea.hbm %s6669_s9, 8192 }
  0x16   :  { %p6166_p8 = scmp.ne.s32.totalorder %s6669_s9, %s6165_s29  ;;  %p6169_p9 = scmp.lt.u32.totalorder %s6165_s29, %s6669_s9 }
  0x18   :  { %p6171_p10 = pnand %p6169_p9, %p6166_p8 }
  0x1a   :  { %6174 = shalt.err (!%p6171_p10)
}
  0x1b   :  { %s6175_s3 = scalar_lea.vmem %s75_s23, 8192  ;;  %p6180_p12 = scmp.lt.s32.totalorder %s75_s23, %s75_s23 }
  0x1c   :  { %p6176_p11 = scmp.ne.s32.totalorder %s75_s23, %s6175_s3  ;;  %p6181_p13 = scmp.lt.s32.totalorder %s6175_s3, %s6175_s3 }
  0x1e   :  { %p6182_p0 = por %p6181_p13, %p6180_p12 }
  0x20   :  { %p6183_p1 = pnand %p6182_p0, %p6176_p11 }
  0x22   :  { %6186 = shalt.err (!%p6183_p1)
}
  0x23   :  { %s6264_s26 = smov 256   ;;  %s6265_s17 = smov 16  }
  0x24   :  { %80 = dma.hbm_to_vmem [thread:$0]  %s6669_s9, 8192, %s75_s23, [#allocation8], %s6264_s26, %s6264_s26, %s6265_s17  }
  0x25   :  { %s6187_s27 = scalar_lea.hbm %s6661_s1, 24576 }
  0x26   :  { %p6188_p2 = scmp.ne.s32.totalorder %s6661_s1, %s6187_s27  ;;  %p6191_p3 = scmp.lt.u32.totalorder %s6187_s27, %s6661_s1 }
  0x28   :  { %p6193_p4 = pnand %p6191_p3, %p6188_p2 }
  0x2a   :  { %6196 = shalt.err (!%p6193_p4)
}
  0x2b   :  { %s6197_s15 = scalar_lea.vmem %s29_s25, 24576  ;;  %p6202_p6 = scmp.lt.s32.totalorder %s29_s25, %s29_s25 }
  0x2c   :  { %p6198_p5 = scmp.ne.s32.totalorder %s29_s25, %s6197_s15  ;;  %p6203_p7 = scmp.lt.s32.totalorder %s6197_s15, %s6197_s15 }
  0x2e   :  { %p6204_p8 = por %p6203_p7, %p6202_p6 }
  0x30   :  { %p6205_p9 = pnand %p6204_p8, %p6198_p5 }
  0x32   :  { %6208 = shalt.err (!%p6205_p9)
}
  0x33   :  { %34 = dma.hbm_to_vmem [thread:$0]  %s6661_s1, 24576, %s29_s25, [#allocation3], %s6264_s26, %s6264_s26, %s6265_s17  }
  0x34   :  { %s6266_s16 = smov [#allocation6]   ;;  %s6267_s20 = smov [#allocation9]  }
  0x35   :  { %s60_s3 = sshll.u32 %s6266_s16, 4  ;;  %s88_s21 = sshll.u32 %s6267_s20, 4  ;;  %s61_s3 = int_to_ptr.vmem [resolvable:$true] %s60_s3  ;;  %s89_s21 = int_to_ptr.vmem [resolvable:$true] %s88_s21 }
  0x36   :  { %s6209_s27 = scalar_lea.hbm %s6667_s7, 4096 }
  0x37   :  { %p6210_p10 = scmp.ne.s32.totalorder %s6667_s7, %s6209_s27  ;;  %p6213_p11 = scmp.lt.u32.totalorder %s6209_s27, %s6667_s7 }
  0x39   :  { %p6215_p12 = pnand %p6213_p11, %p6210_p10 }
  0x3b   :  { %6218 = shalt.err (!%p6215_p12)
}
  0x3c   :  { %s6219_s1 = scalar_lea.vmem %s61_s3, 4096  ;;  %p6224_p0 = scmp.lt.s32.totalorder %s61_s3, %s61_s3 }
  0x3d   :  { %p6220_p13 = scmp.ne.s32.totalorder %s61_s3, %s6219_s1  ;;  %p6225_p1 = scmp.lt.s32.totalorder %s6219_s1, %s6219_s1 }
  0x3f   :  { %p6226_p2 = por %p6225_p1, %p6224_p0 }
  0x41   :  { %p6227_p3 = pnand %p6226_p2, %p6220_p13 }
  0x43   :  { %6230 = shalt.err (!%p6227_p3)
}
  0x44   :  { %66 = dma.hbm_to_vmem [thread:$0]  %s6667_s7, 4096, %s61_s3, [#allocation5], %s6260_s18, %s6260_s18, %s6261_s19  }
  0x45   :  { %s6231_s9 = scalar_lea.hbm %s6671_s11, 24576 }
  0x46   :  { %p6232_p4 = scmp.ne.s32.totalorder %s6671_s11, %s6231_s9  ;;  %p6235_p5 = scmp.lt.u32.totalorder %s6231_s9, %s6671_s11 }
  0x48   :  { %p6237_p6 = pnand %p6235_p5, %p6232_p4 }
  0x4a   :  { %6240 = shalt.err (!%p6237_p6)
}
  0x4b   :  { %s6241_s24 = scalar_lea.vmem %s89_s21, 24576  ;;  %p6246_p8 = scmp.lt.s32.totalorder %s89_s21, %s89_s21 }
  0x4c   :  { %p6242_p7 = scmp.ne.s32.totalorder %s89_s21, %s6241_s24  ;;  %p6247_p9 = scmp.lt.s32.totalorder %s6241_s24, %s6241_s24 }
  0x4e   :  { %p6248_p10 = por %p6247_p9, %p6246_p8 }
  0x50   :  { %p6249_p11 = pnand %p6248_p10, %p6242_p7 }
  0x52   :  { %6252 = shalt.err (!%p6249_p11)
}
  0x53   :  { %s6268_s7 = smov 384   ;;  %s6269_s18 = smov 24  }
  0x54   :  { %94 = dma.hbm_to_vmem [thread:$0]  %s6671_s11, 24576, %s89_s21, [#allocation8], %s6268_s7, %s6268_s7, %s6269_s18  }
  0x55   :  { %6253 = dma.done.wait [#allocation3], 24576  }
  0x56   :  { %6254 = vsyncadd [#allocation3], 4294942720 }
  0x57   :  { %6255 = dma.done.wait [#allocation5], 12288  }
  0x58   :  { %6256 = vsyncadd [#allocation5], 4294955008 }
  0x59   :  { %6257 = dma.done.wait [#allocation8], 32768  }
  0x5a   :  { %6258 = vsyncadd [#allocation8], 4294934528  ;;  %v5244_v0 = vld [vmem:[#allocation2 + $0x4] ss:$16 sps:$4 sm:$0xff]   ;;  %v5248_v2 = vld [vmem:[#allocation2] ss:$16 sps:$4 sm:$0xff]  }
  0x5b   :  { %v5246_v1 = vld [vmem:[#allocation2 + $0x204] ss:$16 sps:$4 sm:$0xff]   ;;  %1322 = vmatprep.subr.bf16.mxu1 %v5244_v0  ;;  %v5249_v3 = vld [vmem:[#allocation2 + $0x200] ss:$16 sps:$4 sm:$0xff]  }
  0x5c   :  { %1365 = vmatprep.subr.bf16.mxu0 %v5246_v1  ;;  %v5250_v4 = vld [vmem:[#allocation2 + $0x24] ss:$16 sps:$4 sm:$0xff]   ;;  %1323 = vmatpush1.bf16.msra.mxu1 %v5248_v2  ;;  %v5254_v6 = vld [vmem:[#allocation2 + $0x20] ss:$16 sps:$4 sm:$0xff]  }
  0x5d   :  { %1366 = vmatpush1.bf16.msra.mxu0 %v5249_v3  ;;  %v5252_v5 = vld [vmem:[#allocation2 + $0x224] ss:$16 sps:$4 sm:$0xff]   ;;  %1324 = vmatprep.subr.bf16.mxu1 %v5250_v4  ;;  %v5255_v7 = vld [vmem:[#allocation2 + $0x220] ss:$16 sps:$4 sm:$0xff]   ;;  %v5351_v3 = vld [vmem:[#allocation2 + $0xc] ss:$16 sps:$4 sm:$0xff]  }
  0x5e   :  { %1367 = vmatprep.subr.bf16.mxu0 %v5252_v5  ;;  %v5256_v8 = vld [vmem:[#allocation2 + $0x44] ss:$16 sps:$4 sm:$0xff]   ;;  %v5260_v10 = vld [vmem:[#allocation2 + $0x40] ss:$16 sps:$4 sm:$0xff]  }
  0x5f   :  { %v5258_v9 = vld [vmem:[#allocation2 + $0x244] ss:$16 sps:$4 sm:$0xff]   ;;  %v5261_v11 = vld [vmem:[#allocation2 + $0x240] ss:$16 sps:$4 sm:$0xff]  }
  0x60   :  { %1325 = vmatpush1.bf16.msra.mxu1 %v5254_v6  ;;  %v5262_v12 = vld [vmem:[#allocation2 + $0x64] ss:$16 sps:$4 sm:$0xff]   ;;  %v5266_v14 = vld [vmem:[#allocation2 + $0x60] ss:$16 sps:$4 sm:$0xff]  }
  0x61   :  { %1368 = vmatpush1.bf16.msra.mxu0 %v5255_v7  ;;  %1326 = vmatprep.subr.bf16.mxu1 %v5256_v8  ;;  %v5264_v13 = vld [vmem:[#allocation2 + $0x264] ss:$16 sps:$4 sm:$0xff]   ;;  %v5267_v15 = vld [vmem:[#allocation2 + $0x260] ss:$16 sps:$4 sm:$0xff]   ;;  %v5349_v7 = vld [vmem:[#allocation2 + $0x8] ss:$16 sps:$4 sm:$0xff]  }
  0x62   :  { %1369 = vmatprep.subr.bf16.mxu0 %v5258_v9  ;;  %v5268_v16 = vld [vmem:[#allocation2 + $0x84] ss:$16 sps:$4 sm:$0xff]   ;;  %v5272_v18 = vld [vmem:[#allocation2 + $0x80] ss:$16 sps:$4 sm:$0xff]   ;;  %v5357_v9 = vld [vmem:[#allocation2 + $0x2c] ss:$16 sps:$4 sm:$0xff]  }
  0x63   :  { %v5270_v17 = vld [vmem:[#allocation2 + $0x284] ss:$16 sps:$4 sm:$0xff]   ;;  %v5273_v19 = vld [vmem:[#allocation2 + $0x280] ss:$16 sps:$4 sm:$0xff]  }
  0x64   :  { %1327 = vmatpush1.bf16.msra.mxu1 %v5260_v10  ;;  %v5274_v20 = vld [vmem:[#allocation2 + $0xa4] ss:$16 sps:$4 sm:$0xff]   ;;  %v5278_v22 = vld [vmem:[#allocation2 + $0xa0] ss:$16 sps:$4 sm:$0xff]  }
  0x65   :  { %1370 = vmatpush1.bf16.msra.mxu0 %v5261_v11  ;;  %1328 = vmatprep.subr.bf16.mxu1 %v5262_v12  ;;  %v5276_v21 = vld [vmem:[#allocation2 + $0x2a4] ss:$16 sps:$4 sm:$0xff]   ;;  %v5279_v23 = vld [vmem:[#allocation2 + $0x2a0] ss:$16 sps:$4 sm:$0xff]   ;;  %v5355_v11 = vld [vmem:[#allocation2 + $0x28] ss:$16 sps:$4 sm:$0xff]  }
  0x66   :  { %1371 = vmatprep.subr.bf16.mxu0 %v5264_v13  ;;  %v5280_v24 = vld [vmem:[#allocation2 + $0xc4] ss:$16 sps:$4 sm:$0xff]   ;;  %v5284_v26 = vld [vmem:[#allocation2 + $0xc0] ss:$16 sps:$4 sm:$0xff]   ;;  %v5363_v13 = vld [vmem:[#allocation2 + $0x4c] ss:$16 sps:$4 sm:$0xff]  }
  0x67   :  { %v5282_v25 = vld [vmem:[#allocation2 + $0x2c4] ss:$16 sps:$4 sm:$0xff]   ;;  %v5285_v27 = vld [vmem:[#allocation2 + $0x2c0] ss:$16 sps:$4 sm:$0xff]  }
  0x68   :  { %1329 = vmatpush1.bf16.msra.mxu1 %v5266_v14  ;;  %v5286_v28 = vld [vmem:[#allocation2 + $0xe4] ss:$16 sps:$4 sm:$0xff]   ;;  %v5290_v30 = vld [vmem:[#allocation2 + $0xe0] ss:$16 sps:$4 sm:$0xff]  }
  0x69   :  { %1372 = vmatpush1.bf16.msra.mxu0 %v5267_v15  ;;  %1330 = vmatprep.subr.bf16.mxu1 %v5268_v16  ;;  %v5288_v29 = vld [vmem:[#allocation2 + $0x2e4] ss:$16 sps:$4 sm:$0xff]   ;;  %v5291_v31 = vld [vmem:[#allocation2 + $0x2e0] ss:$16 sps:$4 sm:$0xff]   ;;  %v5361_v15 = vld [vmem:[#allocation2 + $0x48] ss:$16 sps:$4 sm:$0xff]  }
  0x6a   :  { %1373 = vmatprep.subr.bf16.mxu0 %v5270_v17  ;;  %v5292_v32 = vld [vmem:[#allocation2 + $0x104] ss:$16 sps:$4 sm:$0xff]   ;;  %v5296_v34 = vld [vmem:[#allocation2 + $0x100] ss:$16 sps:$4 sm:$0xff]   ;;  %v5369_v17 = vld [vmem:[#allocation2 + $0x6c] ss:$16 sps:$4 sm:$0xff]  }
  0x6b   :  { %v5294_v33 = vld [vmem:[#allocation2 + $0x304] ss:$16 sps:$4 sm:$0xff]   ;;  %v5297_v35 = vld [vmem:[#allocation2 + $0x300] ss:$16 sps:$4 sm:$0xff]  }
  0x6c   :  { %1331 = vmatpush1.bf16.msra.mxu1 %v5272_v18  ;;  %v5298_v36 = vld [vmem:[#allocation2 + $0x124] ss:$16 sps:$4 sm:$0xff]   ;;  %v5302_v38 = vld [vmem:[#allocation2 + $0x120] ss:$16 sps:$4 sm:$0xff]  }
  0x6d   :  { %1374 = vmatpush1.bf16.msra.mxu0 %v5273_v19  ;;  %1332 = vmatprep.subr.bf16.mxu1 %v5274_v20  ;;  %v5300_v37 = vld [vmem:[#allocation2 + $0x324] ss:$16 sps:$4 sm:$0xff]   ;;  %v5303_v39 = vld [vmem:[#allocation2 + $0x320] ss:$16 sps:$4 sm:$0xff]   ;;  %v5367_v19 = vld [vmem:[#allocation2 + $0x68] ss:$16 sps:$4 sm:$0xff]  }
  0x6e   :  { %1375 = vmatprep.subr.bf16.mxu0 %v5276_v21  ;;  %v5304_v40 = vld [vmem:[#allocation2 + $0x144] ss:$16 sps:$4 sm:$0xff]   ;;  %v5308_v42 = vld [vmem:[#allocation2 + $0x140] ss:$16 sps:$4 sm:$0xff]   ;;  %v5375_v21 = vld [vmem:[#allocation2 + $0x8c] ss:$16 sps:$4 sm:$0xff]  }
  0x6f   :  { %v5306_v41 = vld [vmem:[#allocation2 + $0x344] ss:$16 sps:$4 sm:$0xff]   ;;  %v5309_v43 = vld [vmem:[#allocation2 + $0x340] ss:$16 sps:$4 sm:$0xff]  }
  0x70   :  { %1333 = vmatpush1.bf16.msra.mxu1 %v5278_v22  ;;  %v5310_v44 = vld [vmem:[#allocation2 + $0x164] ss:$16 sps:$4 sm:$0xff]   ;;  %v5314_v46 = vld [vmem:[#allocation2 + $0x160] ss:$16 sps:$4 sm:$0xff]  }
  0x71   :  { %1376 = vmatpush1.bf16.msra.mxu0 %v5279_v23  ;;  %1334 = vmatprep.subr.bf16.mxu1 %v5280_v24  ;;  %v5312_v45 = vld [vmem:[#allocation2 + $0x364] ss:$16 sps:$4 sm:$0xff]   ;;  %v5315_v47 = vld [vmem:[#allocation2 + $0x360] ss:$16 sps:$4 sm:$0xff]   ;;  %v5373_v23 = vld [vmem:[#allocation2 + $0x88] ss:$16 sps:$4 sm:$0xff]  }
  0x72   :  { %1377 = vmatprep.subr.bf16.mxu0 %v5282_v25  ;;  %v5316_v48 = vld [vmem:[#allocation2 + $0x184] ss:$16 sps:$4 sm:$0xff]   ;;  %v5320_v52 = vld [vmem:[#allocation2 + $0x180] ss:$16 sps:$4 sm:$0xff]   ;;  %v5381_v25 = vld [vmem:[#allocation2 + $0xac] ss:$16 sps:$4 sm:$0xff]  }
  0x73   :  { %v5342_v49 = vld [vmem:[%s6660_s0 + $0x4] ss:$24 sps:$4 sm:$0xff]   ;;  %v5321_v53 = vld [vmem:[#allocation2 + $0x380] ss:$16 sps:$4 sm:$0xff]  }
  0x74   :  { %1335 = vmatpush1.bf16.msra.mxu1 %v5284_v26  ;;  %v5318_v50 = vld [vmem:[#allocation2 + $0x384] ss:$16 sps:$4 sm:$0xff]   ;;  %1354 = vmatprep.mubr.bf16.mxu1 %v5342_v49  ;;  %v5326_v56 = vld [vmem:[#allocation2 + $0x1a0] ss:$16 sps:$4 sm:$0xff]  }
  0x75   :  { %1378 = vmatpush1.bf16.msra.mxu0 %v5285_v27  ;;  %1336 = vmatprep.subr.bf16.mxu1 %v5286_v28  ;;  %v6412_v51 = vld [vmem:[%s6660_s0 + $0xc] ss:$24 sps:$4 sm:$0xff]   ;;  %v5327_v57 = vld [vmem:[#allocation2 + $0x3a0] ss:$16 sps:$4 sm:$0xff]   ;;  %v5379_v27 = vld [vmem:[#allocation2 + $0xa8] ss:$16 sps:$4 sm:$0xff]  }
  0x76   :  { %1379 = vmatprep.subr.bf16.mxu0 %v5288_v29  ;;  %1397 = vmatprep.mubr.bf16.mxu0 %v6412_v51  ;;  %v5322_v54 = vld [vmem:[#allocation2 + $0x1a4] ss:$16 sps:$4 sm:$0xff]   ;;  %v5332_v60 = vld [vmem:[#allocation2 + $0x1c0] ss:$16 sps:$4 sm:$0xff]   ;;  %v5387_v29 = vld [vmem:[#allocation2 + $0xcc] ss:$16 sps:$4 sm:$0xff]  }
  0x77   :  { %v5324_v55 = vld [vmem:[#allocation2 + $0x3a4] ss:$16 sps:$4 sm:$0xff]   ;;  %v5333_v61 = vld [vmem:[#allocation2 + $0x3c0] ss:$16 sps:$4 sm:$0xff]  }
  0x78   :  { %1337 = vmatpush1.bf16.msra.mxu1 %v5290_v30  ;;  %v5328_v58 = vld [vmem:[#allocation2 + $0x1c4] ss:$16 sps:$4 sm:$0xff]   ;;  %v5338_v0 = vld [vmem:[#allocation2 + $0x1e0] ss:$16 sps:$4 sm:$0xff]  }
  0x79   :  { %1380 = vmatpush1.bf16.msra.mxu0 %v5291_v31  ;;  %1338 = vmatprep.subr.bf16.mxu1 %v5292_v32  ;;  %v5330_v59 = vld [vmem:[#allocation2 + $0x3c4] ss:$16 sps:$4 sm:$0xff]   ;;  %v5339_v1 = vld [vmem:[#allocation2 + $0x3e0] ss:$16 sps:$4 sm:$0xff]   ;;  %v5385_v31 = vld [vmem:[#allocation2 + $0xc8] ss:$16 sps:$4 sm:$0xff]  }
  0x7a   :  { %1381 = vmatprep.subr.bf16.mxu0 %v5294_v33  ;;  %v5334_v62 = vld [vmem:[#allocation2 + $0x1e4] ss:$16 sps:$4 sm:$0xff]   ;;  %v6418_v4 = vld [vmem:[%s6660_s0] ss:$24 sps:$4 sm:$0xff]   ;;  %v5393_v33 = vld [vmem:[#allocation2 + $0xec] ss:$16 sps:$4 sm:$0xff]  }
  0x7b   :  { %v5336_v63 = vld [vmem:[#allocation2 + $0x3e4] ss:$16 sps:$4 sm:$0xff]   ;;  %v5343_v5 = vld [vmem:[%s6660_s0 + $0x8] ss:$24 sps:$4 sm:$0xff]  }
  0x7c   :  { %1339 = vmatpush1.bf16.msra.mxu1 %v5296_v34  ;;  %v5348_v2 = vld [vmem:[#allocation2 + $0x404] ss:$16 sps:$4 sm:$0xff]   ;;  %v5346_v6 = vld [vmem:[#allocation2 + $0x400] ss:$16 sps:$4 sm:$0xff]  }
  0x7d   :  { %1382 = vmatpush1.bf16.msra.mxu0 %v5297_v35  ;;  %1340 = vmatprep.subr.bf16.mxu1 %v5298_v36  ;;  %v5354_v8 = vld [vmem:[#allocation2 + $0x424] ss:$16 sps:$4 sm:$0xff]   ;;  %v5352_v10 = vld [vmem:[#allocation2 + $0x420] ss:$16 sps:$4 sm:$0xff]   ;;  %v5391_v36 = vld [vmem:[#allocation2 + $0xe8] ss:$16 sps:$4 sm:$0xff]  }
  0x7e   :  { %1383 = vmatprep.subr.bf16.mxu0 %v5300_v37  ;;  %v5360_v12 = vld [vmem:[#allocation2 + $0x444] ss:$16 sps:$4 sm:$0xff]   ;;  %v5358_v14 = vld [vmem:[#allocation2 + $0x440] ss:$16 sps:$4 sm:$0xff]  }
  0x7f   :  { %v5366_v16 = vld [vmem:[#allocation2 + $0x464] ss:$16 sps:$4 sm:$0xff]   ;;  %v5364_v18 = vld [vmem:[#allocation2 + $0x460] ss:$16 sps:$4 sm:$0xff]  }
  0x80   :  { %1341 = vmatpush1.bf16.msra.mxu1 %v5302_v38  ;;  %v5372_v20 = vld [vmem:[#allocation2 + $0x484] ss:$16 sps:$4 sm:$0xff]   ;;  %v5370_v22 = vld [vmem:[#allocation2 + $0x480] ss:$16 sps:$4 sm:$0xff]   ;;  %v5399_v38 = vld [vmem:[#allocation2 + $0x10c] ss:$16 sps:$4 sm:$0xff]  }
  0x81   :  { %1384 = vmatpush1.bf16.msra.mxu0 %v5303_v39  ;;  %1342 = vmatprep.subr.bf16.mxu1 %v5304_v40  ;;  %v5378_v24 = vld [vmem:[#allocation2 + $0x4a4] ss:$16 sps:$4 sm:$0xff]   ;;  %v5376_v26 = vld [vmem:[#allocation2 + $0x4a0] ss:$16 sps:$4 sm:$0xff]   ;;  %v5397_v40 = vld [vmem:[#allocation2 + $0x108] ss:$16 sps:$4 sm:$0xff]  }
  0x82   :  { %1385 = vmatprep.subr.bf16.mxu0 %v5306_v41  ;;  %v5384_v28 = vld [vmem:[#allocation2 + $0x4c4] ss:$16 sps:$4 sm:$0xff]   ;;  %v5382_v30 = vld [vmem:[#allocation2 + $0x4c0] ss:$16 sps:$4 sm:$0xff]  }
  0x83   :  { %v5390_v32 = vld [vmem:[#allocation2 + $0x4e4] ss:$16 sps:$4 sm:$0xff]   ;;  %v5388_v35 = vld [vmem:[#allocation2 + $0x4e0] ss:$16 sps:$4 sm:$0xff]  }
  0x84   :  { %1343 = vmatpush1.bf16.msra.mxu1 %v5308_v42  ;;  %v6427_v34 = vld [vmem:[%s6660_s0 + $0x14] ss:$24 sps:$4 sm:$0xff]   ;;  %v5394_v39 = vld [vmem:[#allocation2 + $0x500] ss:$16 sps:$4 sm:$0xff]  }
  0x85   :  { %1386 = vmatpush1.bf16.msra.mxu0 %v5309_v43  ;;  %1344 = vmatprep.subr.bf16.mxu1 %v5310_v44  ;;  %v5396_v37 = vld [vmem:[#allocation2 + $0x504] ss:$16 sps:$4 sm:$0xff]   ;;  %v5405_v42 = vld [vmem:[#allocation2 + $0x12c] ss:$16 sps:$4 sm:$0xff]   ;;  %v5400_v43 = vld [vmem:[#allocation2 + $0x520] ss:$16 sps:$4 sm:$0xff]  }
  0x86   :  { %1387 = vmatprep.subr.bf16.mxu0 %v5312_v45  ;;  %v5402_v41 = vld [vmem:[#allocation2 + $0x524] ss:$16 sps:$4 sm:$0xff]   ;;  %v5403_v44 = vld [vmem:[#allocation2 + $0x128] ss:$16 sps:$4 sm:$0xff]  }
  0x87   :  { %v5408_v45 = vld [vmem:[#allocation2 + $0x544] ss:$16 sps:$4 sm:$0xff]  }
  0x88   :  { %1345 = vmatpush1.bf16.msra.mxu1 %v5314_v46  ;;  %v5411_v46 = vld [vmem:[#allocation2 + $0x14c] ss:$16 sps:$4 sm:$0xff]  }
  0x89   :  { %1388 = vmatpush1.bf16.msra.mxu0 %v5315_v47  ;;  %1346 = vmatprep.subr.bf16.mxu1 %v5316_v48  ;;  %v5406_v47 = vld [vmem:[#allocation2 + $0x540] ss:$16 sps:$4 sm:$0xff]   ;;  %v5409_v48 = vld [vmem:[#allocation2 + $0x148] ss:$16 sps:$4 sm:$0xff]  }
  0x8a   :  { %1389 = vmatprep.subr.bf16.mxu0 %v5318_v50  ;;  %v5417_v50 = vld [vmem:[#allocation2 + $0x16c] ss:$16 sps:$4 sm:$0xff]  }
  0x8c   :  { %1347 = vmatpush1.bf16.msra.mxu1 %v5320_v52  ;;  %v5412_v52 = vld [vmem:[#allocation2 + $0x560] ss:$16 sps:$4 sm:$0xff]  }
  0x8d   :  { %1390 = vmatpush1.bf16.msra.mxu0 %v5321_v53  ;;  %1348 = vmatprep.subr.bf16.mxu1 %v5322_v54  ;;  %v5415_v53 = vld [vmem:[#allocation2 + $0x168] ss:$16 sps:$4 sm:$0xff]   ;;  %v5420_v54 = vld [vmem:[#allocation2 + $0x584] ss:$16 sps:$4 sm:$0xff]  }
  0x8e   :  { %1391 = vmatprep.subr.bf16.mxu0 %v5324_v55  ;;  %v5423_v55 = vld [vmem:[#allocation2 + $0x18c] ss:$16 sps:$4 sm:$0xff]  }
  0x90   :  { %1349 = vmatpush1.bf16.msra.mxu1 %v5326_v56  ;;  %v5418_v56 = vld [vmem:[#allocation2 + $0x580] ss:$16 sps:$4 sm:$0xff]  }
  0x91   :  { %1392 = vmatpush1.bf16.msra.mxu0 %v5327_v57  ;;  %1350 = vmatprep.subr.bf16.mxu1 %v5328_v58  ;;  %v5421_v57 = vld [vmem:[#allocation2 + $0x188] ss:$16 sps:$4 sm:$0xff]   ;;  %v5426_v58 = vld [vmem:[#allocation2 + $0x5a4] ss:$16 sps:$4 sm:$0xff]  }
  0x92   :  { %1393 = vmatprep.subr.bf16.mxu0 %v5330_v59  ;;  %v5429_v59 = vld [vmem:[#allocation2 + $0x1ac] ss:$16 sps:$4 sm:$0xff]  }
  0x94   :  { %1351 = vmatpush1.bf16.msra.mxu1 %v5332_v60  ;;  %v5424_v60 = vld [vmem:[#allocation2 + $0x5a0] ss:$16 sps:$4 sm:$0xff]  }
  0x95   :  { %1394 = vmatpush1.bf16.msra.mxu0 %v5333_v61  ;;  %1352 = vmatprep.subr.bf16.mxu1 %v5334_v62  ;;  %v5427_v61 = vld [vmem:[#allocation2 + $0x1a8] ss:$16 sps:$4 sm:$0xff]   ;;  %v5432_v62 = vld [vmem:[#allocation2 + $0x5c4] ss:$16 sps:$4 sm:$0xff]  }
  0x96   :  { %1395 = vmatprep.subr.bf16.mxu0 %v5336_v63  ;;  %v5435_v63 = vld [vmem:[#allocation2 + $0x1cc] ss:$16 sps:$4 sm:$0xff]  }
  0x98   :  { %1353 = vmatpush1.bf16.msra.mxu1 %v5338_v0  ;;  %v5430_v0 = vld [vmem:[#allocation2 + $0x5c0] ss:$16 sps:$4 sm:$0xff]  }
  0x99   :  { %1396 = vmatpush1.bf16.msra.mxu0 %v5339_v1  ;;  %1451 = vmatprep.subr.bf16.mxu1 %v5351_v3  ;;  %v5433_v1 = vld [vmem:[#allocation2 + $0x1c8] ss:$16 sps:$4 sm:$0xff]   ;;  %v5441_v3 = vld [vmem:[#allocation2 + $0x1ec] ss:$16 sps:$4 sm:$0xff]  }
  0x9a   :  { %1408 = vmatprep.subr.bf16.mxu0 %v5348_v2  ;;  %v5438_v2 = vld [vmem:[#allocation2 + $0x5e4] ss:$16 sps:$4 sm:$0xff]  }
  0x9b   :  { %1355 = vmatmul.mubr.bf16.vlgmr.msra.gmra.mrb[0].mxu1 %v6418_v4 }
  0x9c   :  { %1398 = vmatmul.mubr.bf16.vlgmr.msra.gmra.mrb[0].mxu0 %v5343_v5  ;;  %1452 = vmatpush1.bf16.msra.mxu1 %v5349_v7  ;;  %v5436_v5 = vld [vmem:[#allocation2 + $0x5e0] ss:$16 sps:$4 sm:$0xff]   ;;  %v5447_v7 = vld [vmem:[#allocation2 + $0x20c] ss:$16 sps:$4 sm:$0xff]  }
  0x9d   :  { %1409 = vmatpush1.bf16.msra.mxu0 %v5346_v6  ;;  %1453 = vmatprep.subr.bf16.mxu1 %v5357_v9  ;;  %v5439_v6 = vld [vmem:[#allocation2 + $0x1e8] ss:$16 sps:$4 sm:$0xff]  }
  0x9e   :  { %1410 = vmatprep.subr.bf16.mxu0 %v5354_v8  ;;  %1483 = vmatprep.mubr.bf16.mxu1 %v5342_v49  ;;  %v5414_v49 = vld [vmem:[#allocation2 + $0x564] ss:$16 sps:$4 sm:$0xff]   ;;  %v5442_v8 = vld [vmem:[%s6660_s0 + $0x10] ss:$24 sps:$4 sm:$0xff]  }
  0x9f   :  { %1440 = vmatprep.mubr.bf16.mxu0 %v6427_v34  ;;  %v5445_v9 = vld [vmem:[#allocation2 + $0x208] ss:$16 sps:$4 sm:$0xff]  }
  0xa0   :  { %1454 = vmatpush1.bf16.msra.mxu1 %v5355_v11  ;;  %v5448_v11 = vld [vmem:[#allocation2 + $0x228] ss:$16 sps:$4 sm:$0xff]  }
  0xa1   :  { %1411 = vmatpush1.bf16.msra.mxu0 %v5352_v10  ;;  %1455 = vmatprep.subr.bf16.mxu1 %v5363_v13  ;;  %v5450_v10 = vld [vmem:[#allocation2 + $0x22c] ss:$16 sps:$4 sm:$0xff]   ;;  %v5451_v13 = vld [vmem:[#allocation2 + $0x248] ss:$16 sps:$4 sm:$0xff]  }
  0xa2   :  { %1412 = vmatprep.subr.bf16.mxu0 %v5360_v12  ;;  %v5453_v12 = vld [vmem:[#allocation2 + $0x24c] ss:$16 sps:$4 sm:$0xff]  }
  0xa4   :  { %1456 = vmatpush1.bf16.msra.mxu1 %v5361_v15  ;;  %v5454_v15 = vld [vmem:[#allocation2 + $0x268] ss:$16 sps:$4 sm:$0xff]  }
  0xa5   :  { %1413 = vmatpush1.bf16.msra.mxu0 %v5358_v14  ;;  %1457 = vmatprep.subr.bf16.mxu1 %v5369_v17  ;;  %v5456_v14 = vld [vmem:[#allocation2 + $0x26c] ss:$16 sps:$4 sm:$0xff]   ;;  %v5457_v17 = vld [vmem:[#allocation2 + $0x288] ss:$16 sps:$4 sm:$0xff]  }
  0xa6   :  { %1414 = vmatprep.subr.bf16.mxu0 %v5366_v16  ;;  %v5459_v16 = vld [vmem:[#allocation2 + $0x28c] ss:$16 sps:$4 sm:$0xff]  }
  0xa8   :  { %1458 = vmatpush1.bf16.msra.mxu1 %v5367_v19  ;;  %v5460_v19 = vld [vmem:[#allocation2 + $0x2a8] ss:$16 sps:$4 sm:$0xff]  }
  0xa9   :  { %1415 = vmatpush1.bf16.msra.mxu0 %v5364_v18  ;;  %1459 = vmatprep.subr.bf16.mxu1 %v5375_v21  ;;  %v5462_v18 = vld [vmem:[#allocation2 + $0x2ac] ss:$16 sps:$4 sm:$0xff]  }
  0xaa   :  { %1416 = vmatprep.subr.bf16.mxu0 %v5372_v20  ;;  %v5463_v20 = vld [vmem:[#allocation2 + $0x2c8] ss:$16 sps:$4 sm:$0xff]   ;;  %v5468_v21 = vld [vmem:[#allocation2 + $0x2ec] ss:$16 sps:$4 sm:$0xff]  }
  0xac   :  { %1460 = vmatpush1.bf16.msra.mxu1 %v5373_v23  ;;  %v5546_v23 = vld [vmem:[#allocation4 + $0x14] ss:$8 sps:$4 sm:$0xff]  }
  0xad   :  { %1417 = vmatpush1.bf16.msra.mxu0 %v5370_v22  ;;  %1461 = vmatprep.subr.bf16.mxu1 %v5381_v25  ;;  %v5543_v22 = vld [vmem:[#allocation4 + $0x4] ss:$8 sps:$4 sm:$0xff]  }
  0xae   :  { %1418 = vmatprep.subr.bf16.mxu0 %v5378_v24  ;;  %v5466_v24 = vld [vmem:[#allocation2 + $0x2e8] ss:$16 sps:$4 sm:$0xff]   ;;  %v5471_v25 = vld [vmem:[#allocation2 + $0x30c] ss:$16 sps:$4 sm:$0xff]  }
  0xb0   :  { %1462 = vmatpush1.bf16.msra.mxu1 %v5379_v27  ;;  %v5549_v27 = vld [vmem:[#allocation4 + $0x24] ss:$8 sps:$4 sm:$0xff]  }
  0xb1   :  { %1419 = vmatpush1.bf16.msra.mxu0 %v5376_v26  ;;  %1463 = vmatprep.subr.bf16.mxu1 %v5387_v29  ;;  %v5544_v26 = vld [vmem:[#allocation4 + $0x10] ss:$8 sps:$4 sm:$0xff]   ;;  %v5474_v29 = vld [vmem:[#allocation2 + $0x32c] ss:$16 sps:$4 sm:$0xff]  }
  0xb2   :  { %1420 = vmatprep.subr.bf16.mxu0 %v5384_v28  ;;  %v5469_v28 = vld [vmem:[#allocation2 + $0x308] ss:$16 sps:$4 sm:$0xff]  }
  0xb4   :  { %1464 = vmatpush1.bf16.msra.mxu1 %v5385_v31  ;;  %v5472_v31 = vld [vmem:[#allocation2 + $0x328] ss:$16 sps:$4 sm:$0xff]  }
  0xb5   :  { %1421 = vmatpush1.bf16.msra.mxu0 %v5382_v30  ;;  %1465 = vmatprep.subr.bf16.mxu1 %v5393_v33  ;;  %v5547_v30 = vld [vmem:[#allocation4 + $0x20] ss:$8 sps:$4 sm:$0xff]   ;;  %v5477_v33 = vld [vmem:[#allocation2 + $0x34c] ss:$16 sps:$4 sm:$0xff]  }
  0xb6   :  { %1422 = vmatprep.subr.bf16.mxu0 %v5390_v32  ;;  %v5552_v32 = vld [vmem:[#allocation4 + $0x34] ss:$8 sps:$4 sm:$0xff]  }
  0xb8   :  { %1466 = vmatpush1.bf16.msra.mxu1 %v5391_v36  ;;  %v5555_v36 = vld [vmem:[#allocation4 + $0x44] ss:$8 sps:$4 sm:$0xff]  }
  0xb9   :  { %1423 = vmatpush1.bf16.msra.mxu0 %v5388_v35  ;;  %1467 = vmatprep.subr.bf16.mxu1 %v5399_v38  ;;  %v5550_v35 = vld [vmem:[#allocation4 + $0x30] ss:$8 sps:$4 sm:$0xff]   ;;  %v5480_v38 = vld [vmem:[#allocation2 + $0x36c] ss:$16 sps:$4 sm:$0xff]  }
  0xba   :  { %1424 = vmatprep.subr.bf16.mxu0 %v5396_v37  ;;  %v5475_v37 = vld [vmem:[#allocation2 + $0x348] ss:$16 sps:$4 sm:$0xff]  }
  0xbc   :  { %1468 = vmatpush1.bf16.msra.mxu1 %v5397_v40  ;;  %v5558_v40 = vld [vmem:[#allocation4 + $0x54] ss:$8 sps:$4 sm:$0xff]  }
  0xbd   :  { %1425 = vmatpush1.bf16.msra.mxu0 %v5394_v39  ;;  %1469 = vmatprep.subr.bf16.mxu1 %v5405_v42  ;;  %v5553_v39 = vld [vmem:[#allocation4 + $0x40] ss:$8 sps:$4 sm:$0xff]   ;;  %v5483_v42 = vld [vmem:[#allocation2 + $0x38c] ss:$16 sps:$4 sm:$0xff]  }
  0xbe   :  { %1426 = vmatprep.subr.bf16.mxu0 %v5402_v41  ;;  %v5478_v41 = vld [vmem:[#allocation2 + $0x368] ss:$16 sps:$4 sm:$0xff]  }
  0xc0   :  { %1470 = vmatpush1.bf16.msra.mxu1 %v5403_v44  ;;  %v5561_v44 = vld [vmem:[#allocation4 + $0x64] ss:$8 sps:$4 sm:$0xff]  }
  0xc1   :  { %1427 = vmatpush1.bf16.msra.mxu0 %v5400_v43  ;;  %1471 = vmatprep.subr.bf16.mxu1 %v5411_v46  ;;  %v5556_v43 = vld [vmem:[#allocation4 + $0x50] ss:$8 sps:$4 sm:$0xff]   ;;  %v5486_v46 = vld [vmem:[#allocation2 + $0x3ac] ss:$16 sps:$4 sm:$0xff]  }
  0xc2   :  { %1428 = vmatprep.subr.bf16.mxu0 %v5408_v45  ;;  %v5481_v45 = vld [vmem:[#allocation2 + $0x388] ss:$16 sps:$4 sm:$0xff]  }
  0xc4   :  { %1472 = vmatpush1.bf16.msra.mxu1 %v5409_v48  ;;  %v5564_v48 = vld [vmem:[#allocation4 + $0x74] ss:$8 sps:$4 sm:$0xff]  }
  0xc5   :  { %1429 = vmatpush1.bf16.msra.mxu0 %v5406_v47  ;;  %1473 = vmatprep.subr.bf16.mxu1 %v5417_v50  ;;  %v5559_v47 = vld [vmem:[#allocation4 + $0x60] ss:$8 sps:$4 sm:$0xff]   ;;  %v5489_v50 = vld [vmem:[#allocation2 + $0x3cc] ss:$16 sps:$4 sm:$0xff]  }
  0xc6   :  { %1430 = vmatprep.subr.bf16.mxu0 %v5414_v49  ;;  %v5484_v49 = vld [vmem:[#allocation2 + $0x3a8] ss:$16 sps:$4 sm:$0xff]  }
  0xc8   :  { %1474 = vmatpush1.bf16.msra.mxu1 %v5415_v53  ;;  %v5567_v53 = vld [vmem:[#allocation4 + $0x84] ss:$8 sps:$4 sm:$0xff]  }
  0xc9   :  { %1431 = vmatpush1.bf16.msra.mxu0 %v5412_v52  ;;  %1475 = vmatprep.subr.bf16.mxu1 %v5423_v55  ;;  %v5562_v52 = vld [vmem:[#allocation4 + $0x70] ss:$8 sps:$4 sm:$0xff]   ;;  %v5492_v55 = vld [vmem:[#allocation2 + $0x3ec] ss:$16 sps:$4 sm:$0xff]  }
  0xca   :  { %1432 = vmatprep.subr.bf16.mxu0 %v5420_v54  ;;  %v5487_v54 = vld [vmem:[#allocation2 + $0x3c8] ss:$16 sps:$4 sm:$0xff]  }
  0xcc   :  { %1476 = vmatpush1.bf16.msra.mxu1 %v5421_v57  ;;  %v5570_v57 = vld [vmem:[#allocation4 + $0x94] ss:$8 sps:$4 sm:$0xff]  }
  0xcd   :  { %1433 = vmatpush1.bf16.msra.mxu0 %v5418_v56  ;;  %1477 = vmatprep.subr.bf16.mxu1 %v5429_v59  ;;  %v5565_v56 = vld [vmem:[#allocation4 + $0x80] ss:$8 sps:$4 sm:$0xff]   ;;  %v5495_v59 = vld [vmem:[#allocation2 + $0x40c] ss:$16 sps:$4 sm:$0xff]  }
  0xce   :  { %1434 = vmatprep.subr.bf16.mxu0 %v5426_v58  ;;  %v5490_v58 = vld [vmem:[#allocation2 + $0x3e8] ss:$16 sps:$4 sm:$0xff]  }
  0xd0   :  { %1478 = vmatpush1.bf16.msra.mxu1 %v5427_v61  ;;  %v5573_v61 = vld [vmem:[#allocation4 + $0xa4] ss:$8 sps:$4 sm:$0xff]  }
  0xd1   :  { %1435 = vmatpush1.bf16.msra.mxu0 %v5424_v60  ;;  %1479 = vmatprep.subr.bf16.mxu1 %v5435_v63  ;;  %v5568_v60 = vld [vmem:[#allocation4 + $0x90] ss:$8 sps:$4 sm:$0xff]   ;;  %v5498_v63 = vld [vmem:[#allocation2 + $0x42c] ss:$16 sps:$4 sm:$0xff]  }
  0xd2   :  { %1436 = vmatprep.subr.bf16.mxu0 %v5432_v62  ;;  %v5493_v62 = vld [vmem:[#allocation2 + $0x408] ss:$16 sps:$4 sm:$0xff]  }
  0xd4   :  { %1480 = vmatpush1.bf16.msra.mxu1 %v5433_v1  ;;  %v5576_v1 = vld [vmem:[#allocation4 + $0xb4] ss:$8 sps:$4 sm:$0xff]  }
  0xd5   :  { %1437 = vmatpush1.bf16.msra.mxu0 %v5430_v0  ;;  %1481 = vmatprep.subr.bf16.mxu1 %v5441_v3  ;;  %v5571_v0 = vld [vmem:[#allocation4 + $0xa0] ss:$8 sps:$4 sm:$0xff]  }
  0xd6   :  { %1438 = vmatprep.subr.bf16.mxu0 %v5438_v2  ;;  %v5496_v2 = vld [vmem:[#allocation2 + $0x428] ss:$16 sps:$4 sm:$0xff]  }
  0xd7   :  { %v6141_v3 = vld [vmem:[%s6660_s0 + $0x8] ss:$24 sps:$4 sm:$0xff]  }
  0xd8   :  { %1482 = vmatpush1.bf16.msra.mxu1 %v5439_v6  ;;  %v5574_v6 = vld [vmem:[#allocation4 + $0xb0] ss:$8 sps:$4 sm:$0xff]  }
  0xd9   :  { %1439 = vmatpush1.bf16.msra.mxu0 %v5436_v5  ;;  %1494 = vmatprep.subr.bf16.mxu1 %v5447_v7  ;;  %v5501_v5 = vld [vmem:[#allocation2 + $0x44c] ss:$16 sps:$4 sm:$0xff]  }
  0xda   :  { %1988 = vmatprep.subr.bf16.mxu0 %v5543_v22  ;;  %v5579_v7 = vld [vmem:[#allocation4 + $0xc4] ss:$8 sps:$4 sm:$0xff]   ;;  %v5588_v22 = vld [vmem:[#allocation4 + $0xf4] ss:$8 sps:$4 sm:$0xff]  }
  0xdb   :  { %1484 = vmatmul.mubr.bf16.vlgmr.msra.gmra.mrb[4].mxu1 %v6418_v4  ;;  %v5465_v4 = vld [vmem:[#allocation2 + $0x2cc] ss:$16 sps:$4 sm:$0xff]  }
  0xdc   :  { %1441 = vmatmul.mubr.bf16.vlgmr.msra.gmra.mrb[0].mxu0 %v5442_v8  ;;  %1495 = vmatpush1.bf16.msra.mxu1 %v5445_v9  ;;  %v5499_v8 = vld [vmem:[#allocation2 + $0x448] ss:$16 sps:$4 sm:$0xff]   ;;  %v5504_v9 = vld [vmem:[#allocation2 + $0x46c] ss:$16 sps:$4 sm:$0xff]  }
  0xdd   :  { %1526 = vmatprep.mubr.bf16.mxu1 %v6412_v51  ;;  %1496 = vmatprep.subr.bf16.mxu1 %v5450_v10  ;;  %v5541_v51 = vld [vmem:[#allocation4] ss:$8 sps:$4 sm:$0xff]  }
  0xde   :  { %1989 = vmatpush1.bf16.msra.mxu0 %v5541_v51  ;;  %v5577_v10 = vld [vmem:[#allocation4 + $0xc0] ss:$8 sps:$4 sm:$0xff]   ;;  %v5519_v51 = vld [vmem:[#allocation2 + $0x50c] ss:$16 sps:$4 sm:$0xff]  }
  0xdf   :  { %1990 = vmatprep.subr.bf16.mxu0 %v5546_v23  ;;  %v5586_v23 = vld [vmem:[#allocation4 + $0xf0] ss:$8 sps:$4 sm:$0xff]  }
  0xe0   :  { %1497 = vmatpush1.bf16.msra.mxu1 %v5448_v11  ;;  %v5582_v11 = vld [vmem:[#allocation4 + $0xd4] ss:$8 sps:$4 sm:$0xff]  }
  0xe1   :  { %1498 = vmatprep.subr.bf16.mxu1 %v5453_v12  ;;  %v5502_v12 = vld [vmem:[#allocation2 + $0x468] ss:$16 sps:$4 sm:$0xff]  }
  0xe2   :  { %1991 = vmatpush1.bf16.msra.mxu0 %v5544_v26  ;;  %v5591_v26 = vld [vmem:[#allocation4 + $0x104] ss:$8 sps:$4 sm:$0xff]  }
  0xe3   :  { %1992 = vmatprep.subr.bf16.mxu0 %v5549_v27  ;;  %v5520_v27 = vld [vmem:[#allocation2 + $0x528] ss:$16 sps:$4 sm:$0xff]  }
  0xe4   :  { %1499 = vmatpush1.bf16.msra.mxu1 %v5451_v13  ;;  %v5507_v13 = vld [vmem:[#allocation2 + $0x48c] ss:$16 sps:$4 sm:$0xff]  }
  0xe5   :  { %1500 = vmatprep.subr.bf16.mxu1 %v5456_v14  ;;  %v5580_v14 = vld [vmem:[#allocation4 + $0xd0] ss:$8 sps:$4 sm:$0xff]  }
  0xe6   :  { %1993 = vmatpush1.bf16.msra.mxu0 %v5547_v30  ;;  %v5528_v30 = vld [vmem:[#allocation2 + $0x56c] ss:$16 sps:$4 sm:$0xff]  }
  0xe7   :  { %1994 = vmatprep.subr.bf16.mxu0 %v5552_v32  ;;  %v5531_v32 = vld [vmem:[#allocation2 + $0x58c] ss:$16 sps:$4 sm:$0xff]  }
  0xe8   :  { %1501 = vmatpush1.bf16.msra.mxu1 %v5454_v15  ;;  %v5505_v15 = vld [vmem:[#allocation2 + $0x488] ss:$16 sps:$4 sm:$0xff]  }
  0xe9   :  { %1502 = vmatprep.subr.bf16.mxu1 %v5459_v16  ;;  %v5508_v16 = vld [vmem:[#allocation2 + $0x4a8] ss:$16 sps:$4 sm:$0xff]  }
  0xea   :  { %1995 = vmatpush1.bf16.msra.mxu0 %v5550_v35  ;;  %v5534_v35 = vld [vmem:[#allocation2 + $0x5ac] ss:$16 sps:$4 sm:$0xff]  }
  0xeb   :  { %1996 = vmatprep.subr.bf16.mxu0 %v5555_v36  ;;  %v5532_v36 = vld [vmem:[#allocation2 + $0x5a8] ss:$16 sps:$4 sm:$0xff]  }
  0xec   :  { %1503 = vmatpush1.bf16.msra.mxu1 %v5457_v17  ;;  %v5513_v17 = vld [vmem:[#allocation2 + $0x4cc] ss:$16 sps:$4 sm:$0xff]  }
  0xed   :  { %1504 = vmatprep.subr.bf16.mxu1 %v5462_v18  ;;  %v5511_v18 = vld [vmem:[#allocation2 + $0x4c8] ss:$16 sps:$4 sm:$0xff]  }
  0xee   :  { %1997 = vmatpush1.bf16.msra.mxu0 %v5553_v39  ;;  %v5540_v39 = vld [vmem:[#allocation2 + $0x5ec] ss:$16 sps:$4 sm:$0xff]  }
  0xef   :  { %1998 = vmatprep.subr.bf16.mxu0 %v5558_v40  ;;  %v5538_v40 = vld [vmem:[#allocation2 + $0x5e8] ss:$16 sps:$4 sm:$0xff]  }
  0xf0   :  { %1505 = vmatpush1.bf16.msra.mxu1 %v5460_v19  ;;  %v5516_v19 = vld [vmem:[#allocation2 + $0x4ec] ss:$16 sps:$4 sm:$0xff]  }
  0xf1   :  { %1506 = vmatprep.subr.bf16.mxu1 %v5465_v4  ;;  %v5585_v4 = vld [vmem:[#allocation4 + $0xe4] ss:$8 sps:$4 sm:$0xff]  }
  0xf2   :  { %1999 = vmatpush1.bf16.msra.mxu0 %v5556_v43 }
  0xf3   :  { %2000 = vmatprep.subr.bf16.mxu0 %v5561_v44 }
  0xf4   :  { %1507 = vmatpush1.bf16.msra.mxu1 %v5463_v20  ;;  %v5583_v20 = vld [vmem:[#allocation4 + $0xe0] ss:$8 sps:$4 sm:$0xff]  }
  0xf5   :  { %1508 = vmatprep.subr.bf16.mxu1 %v5468_v21  ;;  %v5514_v21 = vld [vmem:[#allocation2 + $0x4e8] ss:$16 sps:$4 sm:$0xff]  }
  0xf6   :  { %2001 = vmatpush1.bf16.msra.mxu0 %v5559_v47 }
  0xf7   :  { %2002 = vmatprep.subr.bf16.mxu0 %v5564_v48 }
  0xf8   :  { %1509 = vmatpush1.bf16.msra.mxu1 %v5466_v24  ;;  %v5517_v24 = vld [vmem:[#allocation2 + $0x508] ss:$16 sps:$4 sm:$0xff]  }
  0xf9   :  { %1510 = vmatprep.subr.bf16.mxu1 %v5471_v25  ;;  %v5522_v25 = vld [vmem:[#allocation2 + $0x52c] ss:$16 sps:$4 sm:$0xff]  }
  0xfa   :  { %2003 = vmatpush1.bf16.msra.mxu0 %v5562_v52 }
  0xfb   :  { %2004 = vmatprep.subr.bf16.mxu0 %v5567_v53 }
  0xfc   :  { %1511 = vmatpush1.bf16.msra.mxu1 %v5469_v28  ;;  %v5525_v28 = vld [vmem:[#allocation2 + $0x54c] ss:$16 sps:$4 sm:$0xff]  }
  0xfd   :  { %1512 = vmatprep.subr.bf16.mxu1 %v5474_v29  ;;  %v5523_v29 = vld [vmem:[#allocation2 + $0x548] ss:$16 sps:$4 sm:$0xff]  }
  0xfe   :  { %2005 = vmatpush1.bf16.msra.mxu0 %v5565_v56 }
  0xff   :  { %2006 = vmatprep.subr.bf16.mxu0 %v5570_v57 }
 0x100   :  { %1513 = vmatpush1.bf16.msra.mxu1 %v5472_v31  ;;  %v5526_v31 = vld [vmem:[#allocation2 + $0x568] ss:$16 sps:$4 sm:$0xff]  }
 0x101   :  { %1514 = vmatprep.subr.bf16.mxu1 %v5477_v33  ;;  %v5529_v33 = vld [vmem:[#allocation2 + $0x588] ss:$16 sps:$4 sm:$0xff]  }
 0x102   :  { %2007 = vmatpush1.bf16.msra.mxu0 %v5568_v60 }
 0x103   :  { %2008 = vmatprep.subr.bf16.mxu0 %v5573_v61 }
 0x104   :  { %1515 = vmatpush1.bf16.msra.mxu1 %v5475_v37  ;;  %v5537_v37 = vld [vmem:[#allocation2 + $0x5cc] ss:$16 sps:$4 sm:$0xff]  }
 0x105   :  { %1516 = vmatprep.subr.bf16.mxu1 %v5480_v38  ;;  %v5535_v38 = vld [vmem:[#allocation2 + $0x5c8] ss:$16 sps:$4 sm:$0xff]  }
 0x106   :  { %2009 = vmatpush1.bf16.msra.mxu0 %v5571_v0 }
 0x107   :  { %2010 = vmatprep.subr.bf16.mxu0 %v5576_v1 }
 0x108   :  { %1517 = vmatpush1.bf16.msra.mxu1 %v5478_v41  ;;  %v6142_v41 = vld [vmem:[%s6660_s0 + $0x10] ss:$24 sps:$4 sm:$0xff]  }
 0x109   :  { %1518 = vmatprep.subr.bf16.mxu1 %v5483_v42 }
 0x10a   :  { %2011 = vmatpush1.bf16.msra.mxu0 %v5574_v6 }
 0x10b   :  { %2012 = vmatprep.subr.bf16.mxu0 %v5579_v7 }
 0x10c   :  { %1519 = vmatpush1.bf16.msra.mxu1 %v5481_v45 }
 0x10d   :  { %1520 = vmatprep.subr.bf16.mxu1 %v5486_v46  ;;  %v312_v46 = vlaneseq }
 0x10e   :  { %2013 = vmatpush1.bf16.msra.mxu0 %v5577_v10  ;;  %v5594_v10 = vld [vmem:[#allocation4 + $0x114] ss:$8 sps:$4 sm:$0xff]  }
 0x10f   :  { %2014 = vmatprep.subr.bf16.mxu0 %v5582_v11  ;;  %v6442_v47 = vshrl.u32 %v312_v46, 7  ;;  %v5637_v11 = vld [vmem:[%s6665_s5] ss:$8 sps:$4 sm:$0xff]   ;;  %v5664_v46 = vld [vmem:[%s6665_s5 + $0x90] ss:$8 sps:$4 sm:$0xff]  }
 0x110   :  { %1521 = vmatpush1.bf16.msra.mxu1 %v5484_v49  ;;  %v6450_v49 = vld [vmem:[%s6662_s2] sm:$0xf] }
 0x111   :  { %1522 = vmatprep.subr.bf16.mxu1 %v5489_v50  ;;  %v6445_v48 = vsub.s32 0, %v6442_v47  ;;  %v6453_v50 = vsub.s32 1, %v6442_v47 }
 0x112   :  { %2015 = vmatpush1.bf16.msra.mxu0 %v5580_v14  ;;  %v5642_v14 = vld [vmem:[%s6665_s5 + $0x14] ss:$8 sps:$4 sm:$0xff]  }
 0x113   :  { %2016 = vmatprep.subr.bf16.mxu0 %v5585_v4  ;;  %v315_v52 = vrot.slane %v6450_v49, %v6445_v48  ;;  %v319_v53 = vrot.slane %v6450_v49, %v6453_v50  ;;  %v5648_v4 = vld [vmem:[%s6665_s5 + $0x34] ss:$8 sps:$4 sm:$0xff]  }
 0x114   :  { %1523 = vmatpush1.bf16.msra.mxu1 %v5487_v54 }
 0x115   :  { %1524 = vmatprep.subr.bf16.mxu1 %v5492_v55 }
 0x116   :  { %2017 = vmatpush1.bf16.msra.mxu0 %v5583_v20  ;;  %v5598_v20 = vld [vmem:[#allocation4 + $0x130] ss:$8 sps:$4 sm:$0xff]  }
 0x117   :  { %2018 = vmatprep.subr.bf16.mxu0 %v5588_v22  ;;  %v5651_v22 = vld [vmem:[%s6665_s5 + $0x44] ss:$8 sps:$4 sm:$0xff]  }
 0x118   :  { %1525 = vmatpush1.bf16.msra.mxu1 %v5490_v58 }
 0x119   :  { %1537 = vmatprep.subr.bf16.mxu1 %v5495_v59 }
 0x11a   :  { %2019 = vmatpush1.bf16.msra.mxu0 %v5586_v23  ;;  %v5601_v23 = vld [vmem:[#allocation4 + $0x140] ss:$8 sps:$4 sm:$0xff]  }
 0x11b   :  { %1527 = vmatmul.mubr.bf16.vlgmr.msra.gmra.mrb[4].mxu1 %v6141_v3  ;;  %2031 = vmatprep.subr.bf16.mxu0 %v5591_v26  ;;  %v5654_v26 = vld [vmem:[%s6665_s5 + $0x54] ss:$8 sps:$4 sm:$0xff]  }
 0x11c   :  { %1538 = vmatpush1.bf16.msra.mxu1 %v5493_v62  ;;  %1569 = vmatprep.mubr.bf16.mxu1 %v6427_v34  ;;  %v5510_v34 = vld [vmem:[#allocation2 + $0x4ac] ss:$16 sps:$4 sm:$0xff]  }
 0x11d   :  { %1539 = vmatprep.subr.bf16.mxu1 %v5498_v63 }
 0x120   :  { %1540 = vmatpush1.bf16.msra.mxu1 %v5496_v2 }
 0x121   :  { %1541 = vmatprep.subr.bf16.mxu1 %v5501_v5 }
 0x124   :  { %1542 = vmatpush1.bf16.msra.mxu1 %v5499_v8 }
 0x125   :  { %1543 = vmatprep.subr.bf16.mxu1 %v5504_v9  ;;  %v5589_v9 = vld [vmem:[#allocation4 + $0x100] ss:$8 sps:$4 sm:$0xff]  }
 0x128   :  { %1544 = vmatpush1.bf16.msra.mxu1 %v5502_v12  ;;  %v5639_v12 = vld [vmem:[%s6665_s5 + $0x4] ss:$8 sps:$4 sm:$0xff]  }
 0x129   :  { %1545 = vmatprep.subr.bf16.mxu1 %v5507_v13  ;;  %v5592_v13 = vld [vmem:[#allocation4 + $0x110] ss:$8 sps:$4 sm:$0xff]  }
 0x12c   :  { %1546 = vmatpush1.bf16.msra.mxu1 %v5505_v15  ;;  %v5597_v15 = vld [vmem:[#allocation4 + $0x124] ss:$8 sps:$4 sm:$0xff]  }
 0x12d   :  { %1547 = vmatprep.subr.bf16.mxu1 %v5510_v34  ;;  %v5640_v34 = vld [vmem:[%s6665_s5 + $0x10] ss:$8 sps:$4 sm:$0xff]  }
 0x130   :  { %1548 = vmatpush1.bf16.msra.mxu1 %v5508_v16  ;;  %v5645_v16 = vld [vmem:[%s6665_s5 + $0x24] ss:$8 sps:$4 sm:$0xff]  }
 0x131   :  { %1549 = vmatprep.subr.bf16.mxu1 %v5513_v17  ;;  %v5595_v17 = vld [vmem:[#allocation4 + $0x120] ss:$8 sps:$4 sm:$0xff]  }
 0x134   :  { %1550 = vmatpush1.bf16.msra.mxu1 %v5511_v18  ;;  %v5600_v18 = vld [vmem:[#allocation4 + $0x134] ss:$8 sps:$4 sm:$0xff]  }
 0x135   :  { %1551 = vmatprep.subr.bf16.mxu1 %v5516_v19  ;;  %v5643_v19 = vld [vmem:[%s6665_s5 + $0x20] ss:$8 sps:$4 sm:$0xff]  }
 0x138   :  { %1552 = vmatpush1.bf16.msra.mxu1 %v5514_v21  ;;  %v5603_v21 = vld [vmem:[#allocation4 + $0x144] ss:$8 sps:$4 sm:$0xff]  }
 0x139   :  { %1553 = vmatprep.subr.bf16.mxu1 %v5519_v51  ;;  %v5646_v51 = vld [vmem:[%s6665_s5 + $0x30] ss:$8 sps:$4 sm:$0xff]  }
 0x13c   :  { %1554 = vmatpush1.bf16.msra.mxu1 %v5517_v24  ;;  %v5606_v24 = vld [vmem:[#allocation4 + $0x154] ss:$8 sps:$4 sm:$0xff]  }
 0x13d   :  { %1555 = vmatprep.subr.bf16.mxu1 %v5522_v25  ;;  %v5649_v25 = vld [vmem:[%s6665_s5 + $0x40] ss:$8 sps:$4 sm:$0xff]  }
 0x140   :  { %1556 = vmatpush1.bf16.msra.mxu1 %v5520_v27  ;;  %v5604_v27 = vld [vmem:[#allocation4 + $0x150] ss:$8 sps:$4 sm:$0xff]  }
 0x141   :  { %1557 = vmatprep.subr.bf16.mxu1 %v5525_v28  ;;  %v5609_v28 = vld [vmem:[#allocation4 + $0x164] ss:$8 sps:$4 sm:$0xff]  }
 0x144   :  { %1558 = vmatpush1.bf16.msra.mxu1 %v5523_v29  ;;  %v5652_v29 = vld [vmem:[%s6665_s5 + $0x50] ss:$8 sps:$4 sm:$0xff]  }
 0x145   :  { %1559 = vmatprep.subr.bf16.mxu1 %v5528_v30  ;;  %v5657_v30 = vld [vmem:[%s6665_s5 + $0x64] ss:$8 sps:$4 sm:$0xff]  }
 0x148   :  { %1560 = vmatpush1.bf16.msra.mxu1 %v5526_v31  ;;  %v5607_v31 = vld [vmem:[#allocation4 + $0x160] ss:$8 sps:$4 sm:$0xff]  }
 0x149   :  { %1561 = vmatprep.subr.bf16.mxu1 %v5531_v32  ;;  %v5612_v32 = vld [vmem:[#allocation4 + $0x174] ss:$8 sps:$4 sm:$0xff]  }
 0x14c   :  { %1562 = vmatpush1.bf16.msra.mxu1 %v5529_v33  ;;  %v5655_v33 = vld [vmem:[%s6665_s5 + $0x60] ss:$8 sps:$4 sm:$0xff]  }
 0x14d   :  { %1563 = vmatprep.subr.bf16.mxu1 %v5534_v35  ;;  %v5660_v35 = vld [vmem:[%s6665_s5 + $0x74] ss:$8 sps:$4 sm:$0xff]  }
 0x150   :  { %1564 = vmatpush1.bf16.msra.mxu1 %v5532_v36  ;;  %v5610_v36 = vld [vmem:[#allocation4 + $0x170] ss:$8 sps:$4 sm:$0xff]  }
 0x151   :  { %1565 = vmatprep.subr.bf16.mxu1 %v5537_v37  ;;  %v5615_v37 = vld [vmem:[#allocation4 + $0x184] ss:$8 sps:$4 sm:$0xff]  }
 0x154   :  { %1566 = vmatpush1.bf16.msra.mxu1 %v5535_v38  ;;  %v5658_v38 = vld [vmem:[%s6665_s5 + $0x70] ss:$8 sps:$4 sm:$0xff]  }
 0x155   :  { %1567 = vmatprep.subr.bf16.mxu1 %v5540_v39  ;;  %v5663_v39 = vld [vmem:[%s6665_s5 + $0x84] ss:$8 sps:$4 sm:$0xff]  }
 0x158   :  { %1568 = vmatpush1.bf16.msra.mxu1 %v5538_v40  ;;  %v5613_v40 = vld [vmem:[#allocation4 + $0x180] ss:$8 sps:$4 sm:$0xff]  }
 0x159   :  { %2284 = vmatprep.subr.bf16.mxu1 %v5639_v12 }
 0x15b   :  { %1570 = vmatmul.mubr.bf16.vlgmr.msra.gmra.mrb[4].mxu1 %v6142_v41  ;;  %v5618_v41 = vld [vmem:[#allocation4 + $0x194] ss:$8 sps:$4 sm:$0xff]  }
 0x15c   :  { %2285 = vmatpush1.bf16.msra.mxu1 %v5637_v11 }
 0x15d   :  { %2286 = vmatprep.subr.bf16.mxu1 %v5642_v14 }
 0x160   :  { %2287 = vmatpush1.bf16.msra.mxu1 %v5640_v34 }
 0x161   :  { %2288 = vmatprep.subr.bf16.mxu1 %v5645_v16 }
 0x164   :  { %2289 = vmatpush1.bf16.msra.mxu1 %v5643_v19 }
 0x165   :  { %2290 = vmatprep.subr.bf16.mxu1 %v5648_v4 }
 0x168   :  { %2291 = vmatpush1.bf16.msra.mxu1 %v5646_v51 }
 0x169   :  { %2292 = vmatprep.subr.bf16.mxu1 %v5651_v22 }
 0x16c   :  { %2293 = vmatpush1.bf16.msra.mxu1 %v5649_v25  ;;  %v5682_v25 = vld [vmem:[%s6665_s5 + $0xf0] ss:$8 sps:$4 sm:$0xff]  }
 0x16d   :  { %2294 = vmatprep.subr.bf16.mxu1 %v5654_v26  ;;  %v5687_v26 = vld [vmem:[#allocation6 + $0x4] ss:$8 sps:$4 sm:$0xff]  }
 0x16e   :  { %v1356_v42 = vpop.f32.mrb[0].mxu1 }
 0x16f   :  { %v1358_v43 = vpop.f32.mrb[1].mxu1  ;;  %v1357_v54 = vadd.f32 %v1356_v42, %v315_v52  ;;  %v5661_v42 = vld [vmem:[%s6665_s5 + $0x80] ss:$8 sps:$4 sm:$0xff]  }
 0x170   :  { %v1360_v44 = vpop.f32.mrb[2].mxu1  ;;  %v1359_v55 = vadd.f32 %v1358_v43, %v319_v53  ;;  %2295 = vmatpush1.bf16.msra.mxu1 %v5652_v29  ;;  %v5666_v43 = vld [vmem:[%s6665_s5 + $0x94] ss:$8 sps:$4 sm:$0xff]  }
 0x171   :  { %v1362_v45 = vpop.f32.mrb[3].mxu1  ;;  %v1361_v57 = vadd.f32 %v1360_v44, %v315_v52  ;;  %2296 = vmatprep.subr.bf16.mxu1 %v5657_v30  ;;  %v5616_v44 = vld [vmem:[#allocation4 + $0x190] ss:$8 sps:$4 sm:$0xff]   ;;  %v5669_v52 = vld [vmem:[%s6665_s5 + $0xa4] ss:$8 sps:$4 sm:$0xff]  }
 0x172   :  { %v1363_v60 = vadd.f32 %v1362_v45, %v319_v53  ;;  %v5621_v45 = vld [vmem:[#allocation4 + $0x1a4] ss:$8 sps:$4 sm:$0xff]   ;;  %v5619_v53 = vld [vmem:[#allocation4 + $0x1a0] ss:$8 sps:$4 sm:$0xff]  }
 0x174   :  { %2297 = vmatpush1.bf16.msra.mxu1 %v5655_v33 }
 0x175   :  { %2298 = vmatprep.subr.bf16.mxu1 %v5660_v35 }
 0x178   :  { %2299 = vmatpush1.bf16.msra.mxu1 %v5658_v38 }
 0x179   :  { %2300 = vmatprep.subr.bf16.mxu1 %v5663_v39 }
 0x17c   :  { %2301 = vmatpush1.bf16.msra.mxu1 %v5661_v42 }
 0x17d   :  { %2302 = vmatprep.subr.bf16.mxu1 %v5666_v43 }
 0x180   :  { %2303 = vmatpush1.bf16.msra.mxu1 %v5664_v46  ;;  %v5690_v46 = vld [vmem:[#allocation6 + $0x14] ss:$8 sps:$4 sm:$0xff]  }
 0x181   :  { %2304 = vmatprep.subr.bf16.mxu1 %v5669_v52  ;;  %v5688_v52 = vld [vmem:[#allocation6 + $0x10] ss:$8 sps:$4 sm:$0xff]  }
 0x1af   :  { %v1442_v56 = vpop.f32.mrb[0].mxu0 }
 0x1b0   :  { %v5178_v58 = vadd.f32 %v1442_v56, %v1357_v54  ;;  %v1444_v59 = vpop.f32.mrb[1].mxu0  ;;  %v5624_v54 = vld [vmem:[#allocation4 + $0x1b4] ss:$8 sps:$4 sm:$0xff]  }
 0x1b1   :  { %v5180_v61 = vadd.f32 %v1444_v59, %v1359_v55  ;;  %v1446_v62 = vpop.f32.mrb[2].mxu0  ;;  %v5667_v55 = vld [vmem:[%s6665_s5 + $0xa0] ss:$8 sps:$4 sm:$0xff]   ;;  %v5672_v56 = vld [vmem:[%s6665_s5 + $0xb4] ss:$8 sps:$4 sm:$0xff]  }
 0x1b2   :  { %v5182_v63 = vadd.f32 %v1446_v62, %v1361_v57  ;;  %v1448_v0 = vpop.f32.mrb[3].mxu0  ;;  %v1580_v2 = vmax.f32 %v5178_v58, 0.0  ;;  %v5622_v57 = vld [vmem:[#allocation4 + $0x1b0] ss:$8 sps:$4 sm:$0xff]   ;;  %v5627_v58 = vld [vmem:[#allocation4 + $0x1c4] ss:$8 sps:$4 sm:$0xff]   ;;  %2305 = vmatpush1.bf16.msra.mxu1 %v5667_v55 }
 0x1b3   :  { %v5184_v1 = vadd.f32 %v1448_v0, %v1363_v60  ;;  %v1581_v5 = vmax.f32 %v5180_v61, 0.0  ;;  %v5670_v59 = vld [vmem:[%s6665_s5 + $0xb0] ss:$8 sps:$4 sm:$0xff]   ;;  %2306 = vmatprep.subr.bf16.mxu1 %v5672_v56  ;;  %v5675_v60 = vld [vmem:[%s6665_s5 + $0xc4] ss:$8 sps:$4 sm:$0xff]  }
 0x1b4   :  { %v1584_v3 = vmax.f32 %v5182_v63, 0.0  ;;  %v5625_v61 = vld [vmem:[#allocation4 + $0x1c0] ss:$8 sps:$4 sm:$0xff]   ;;  %v5630_v62 = vld [vmem:[#allocation4 + $0x1d4] ss:$8 sps:$4 sm:$0xff]  }
 0x1b5   :  { %v1585_v6 = vmax.f32 %v5184_v1, 0.0  ;;  %v5673_v63 = vld [vmem:[%s6665_s5 + $0xc0] ss:$8 sps:$4 sm:$0xff]   ;;  %v5678_v0 = vld [vmem:[%s6665_s5 + $0xd4] ss:$8 sps:$4 sm:$0xff]  }
 0x1b6   :  { %v1588_v7 = vpack.c.bf16 %v1584_v3, %v1580_v2  ;;  %2307 = vmatpush1.bf16.msra.mxu1 %v5670_v59  ;;  %v5628_v1 = vld [vmem:[#allocation4 + $0x1d0] ss:$8 sps:$4 sm:$0xff]   ;;  %v5633_v2 = vld [vmem:[#allocation4 + $0x1e4] ss:$8 sps:$4 sm:$0xff]   ;;  %v5696_v55 = vld [vmem:[#allocation6 + $0x34] ss:$8 sps:$4 sm:$0xff]  }
 0x1b7   :  { %v1589_v8 = vpack.c.bf16 %v1585_v6, %v1581_v5  ;;  %2308 = vmatprep.subr.bf16.mxu1 %v5675_v60  ;;  %v5676_v3 = vld [vmem:[%s6665_s5 + $0xd0] ss:$8 sps:$4 sm:$0xff]   ;;  %v5631_v5 = vld [vmem:[#allocation4 + $0x1e0] ss:$8 sps:$4 sm:$0xff]   ;;  %v5636_v6 = vld [vmem:[#allocation4 + $0x1f4] ss:$8 sps:$4 sm:$0xff]  }
 0x1b8   :  { %v5694_v56 = vld [vmem:[#allocation6 + $0x30] ss:$8 sps:$4 sm:$0xff]   ;;  %v5702_v59 = vld [vmem:[#allocation6 + $0x54] ss:$8 sps:$4 sm:$0xff]  }
 0x1b9   :  { %2020 = vmatprep.mubr.bf16.mxu0 %v1589_v8  ;;  %v6544_v8 = vsub.s32 2, %v6442_v47  ;;  %v5700_v60 = vld [vmem:[#allocation6 + $0x50] ss:$8 sps:$4 sm:$0xff]  }
 0x1ba   :  { %2021 = vmatmul.mubr.bf16.vlgmr.msra.gmra.mrb[4].mxu0 %v1588_v7  ;;  %2309 = vmatpush1.bf16.msra.mxu1 %v5673_v63  ;;  %v5634_v7 = vld [vmem:[#allocation4 + $0x1f0] ss:$8 sps:$4 sm:$0xff]   ;;  %v5708_v63 = vld [vmem:[#allocation6 + $0x74] ss:$8 sps:$4 sm:$0xff]  }
 0x1bb   :  { %2032 = vmatpush1.bf16.msra.mxu0 %v5589_v9  ;;  %2310 = vmatprep.subr.bf16.mxu1 %v5678_v0  ;;  %v6547_v9 = vsub.s32 3, %v6442_v47  ;;  %v5706_v0 = vld [vmem:[#allocation6 + $0x70] ss:$8 sps:$4 sm:$0xff]  }
 0x1bc   :  { %2033 = vmatprep.subr.bf16.mxu0 %v5594_v10  ;;  %v323_v10 = vrot.slane %v6450_v49, %v6544_v8 }
 0x1bd   :  { %v327_v11 = vrot.slane %v6450_v49, %v6547_v9  ;;  %v5681_v49 = vld [vmem:[%s6665_s5 + $0xe4] ss:$8 sps:$4 sm:$0xff]  }
 0x1be   :  { %2311 = vmatpush1.bf16.msra.mxu1 %v5676_v3  ;;  %v5714_v3 = vld [vmem:[#allocation6 + $0x94] ss:$8 sps:$4 sm:$0xff]  }
 0x1bf   :  { %2034 = vmatpush1.bf16.msra.mxu0 %v5592_v13  ;;  %2312 = vmatprep.subr.bf16.mxu1 %v5681_v49  ;;  %v5745_v49 = vld [vmem:[#allocation7 + $0x40] ss:$16 sps:$4 sm:$0xff]  }
 0x1c0   :  { %2035 = vmatprep.subr.bf16.mxu0 %v5597_v15 }
 0x1c3   :  { %2036 = vmatpush1.bf16.msra.mxu0 %v5595_v17 }
 0x1c4   :  { %2037 = vmatprep.subr.bf16.mxu0 %v5600_v18 }
 0x1c7   :  { %2038 = vmatpush1.bf16.msra.mxu0 %v5598_v20 }
 0x1c8   :  { %2039 = vmatprep.subr.bf16.mxu0 %v5603_v21 }
 0x1cb   :  { %2040 = vmatpush1.bf16.msra.mxu0 %v5601_v23  ;;  %v5679_v23 = vld [vmem:[%s6665_s5 + $0xe0] ss:$8 sps:$4 sm:$0xff]  }
 0x1cc   :  { %2041 = vmatprep.subr.bf16.mxu0 %v5606_v24  ;;  %2313 = vmatpush1.bf16.msra.mxu1 %v5679_v23  ;;  %v5684_v24 = vld [vmem:[%s6665_s5 + $0xf4] ss:$8 sps:$4 sm:$0xff]  }
 0x1cd   :  { %2314 = vmatprep.subr.bf16.mxu1 %v5684_v24  ;;  %v5753_v23 = vld [vmem:[#allocation7 + $0x64] ss:$16 sps:$4 sm:$0xff]   ;;  %v5751_v24 = vld [vmem:[#allocation7 + $0x60] ss:$16 sps:$4 sm:$0xff]  }
 0x1cf   :  { %2042 = vmatpush1.bf16.msra.mxu0 %v5604_v27  ;;  %v1656_v27 = vld [vmem:[%s6664_s4] sm:$0x3] }
 0x1d0   :  { %2043 = vmatprep.subr.bf16.mxu0 %v5609_v28  ;;  %2315 = vmatpush1.bf16.msra.mxu1 %v5682_v25  ;;  %v1661_v28 = vrot.slane %v1656_v27, %v6445_v48  ;;  %v1665_v29 = vrot.slane %v1656_v27, %v6453_v50  ;;  %v5759_v25 = vld [vmem:[#allocation7 + $0x84] ss:$16 sps:$4 sm:$0xff]  }
 0x1d1   :  { %2533 = vmatprep.subr.bf16.mxu1 %v5687_v26  ;;  %v5757_v26 = vld [vmem:[#allocation7 + $0x80] ss:$16 sps:$4 sm:$0xff]   ;;  %v5765_v27 = vld [vmem:[#allocation7 + $0xa4] ss:$16 sps:$4 sm:$0xff]  }
 0x1d3   :  { %2044 = vmatpush1.bf16.msra.mxu0 %v5607_v31 }
 0x1d4   :  { %2045 = vmatprep.subr.bf16.mxu0 %v5612_v32 }
 0x1d7   :  { %2046 = vmatpush1.bf16.msra.mxu0 %v5610_v36 }
 0x1d8   :  { %2047 = vmatprep.subr.bf16.mxu0 %v5615_v37 }
 0x1db   :  { %2048 = vmatpush1.bf16.msra.mxu0 %v5613_v40 }
 0x1dc   :  { %2049 = vmatprep.subr.bf16.mxu0 %v5618_v41 }
 0x1df   :  { %2050 = vmatpush1.bf16.msra.mxu0 %v5616_v44 }
 0x1e0   :  { %2051 = vmatprep.subr.bf16.mxu0 %v5621_v45  ;;  %v5685_v45 = vld [vmem:[#allocation6] ss:$8 sps:$4 sm:$0xff]  }
 0x1e3   :  { %2052 = vmatpush1.bf16.msra.mxu0 %v5619_v53  ;;  %v5693_v53 = vld [vmem:[#allocation6 + $0x24] ss:$8 sps:$4 sm:$0xff]  }
 0x1e4   :  { %2053 = vmatprep.subr.bf16.mxu0 %v5624_v54  ;;  %v5691_v54 = vld [vmem:[#allocation6 + $0x20] ss:$8 sps:$4 sm:$0xff]  }
 0x1e7   :  { %2054 = vmatpush1.bf16.msra.mxu0 %v5622_v57  ;;  %v5699_v57 = vld [vmem:[#allocation6 + $0x44] ss:$8 sps:$4 sm:$0xff]  }
 0x1e8   :  { %2055 = vmatprep.subr.bf16.mxu0 %v5627_v58  ;;  %v5697_v58 = vld [vmem:[#allocation6 + $0x40] ss:$8 sps:$4 sm:$0xff]  }
 0x1eb   :  { %2056 = vmatpush1.bf16.msra.mxu0 %v5625_v61  ;;  %v5705_v61 = vld [vmem:[#allocation6 + $0x64] ss:$8 sps:$4 sm:$0xff]  }
 0x1ec   :  { %2057 = vmatprep.subr.bf16.mxu0 %v5630_v62  ;;  %v5703_v62 = vld [vmem:[#allocation6 + $0x60] ss:$8 sps:$4 sm:$0xff]  }
 0x1ef   :  { %2058 = vmatpush1.bf16.msra.mxu0 %v5628_v1  ;;  %v5711_v1 = vld [vmem:[#allocation6 + $0x84] ss:$8 sps:$4 sm:$0xff]  }
 0x1f0   :  { %2059 = vmatprep.subr.bf16.mxu0 %v5633_v2  ;;  %v5709_v2 = vld [vmem:[#allocation6 + $0x80] ss:$8 sps:$4 sm:$0xff]  }
 0x1f3   :  { %2060 = vmatpush1.bf16.msra.mxu0 %v5631_v5  ;;  %v5712_v5 = vld [vmem:[#allocation6 + $0x90] ss:$8 sps:$4 sm:$0xff]  }
 0x1f4   :  { %2061 = vmatprep.subr.bf16.mxu0 %v5636_v6  ;;  %v5717_v6 = vld [vmem:[#allocation6 + $0xa4] ss:$8 sps:$4 sm:$0xff]  }
 0x1f7   :  { %2062 = vmatpush1.bf16.msra.mxu0 %v5634_v7  ;;  %v5715_v7 = vld [vmem:[#allocation6 + $0xa0] ss:$8 sps:$4 sm:$0xff]  }
 0x22e   :  { %v1571_v12 = vpop.f32.mrb[4].mxu1 }
 0x22f   :  { %v5185_v13 = vadd.f32 %v1571_v12, %v323_v10  ;;  %v1573_v14 = vpop.f32.mrb[5].mxu1  ;;  %v5723_v12 = vld [vmem:[#allocation6 + $0xc4] ss:$8 sps:$4 sm:$0xff]  }
 0x230   :  { %v5186_v15 = vadd.f32 %v1573_v14, %v327_v11  ;;  %v1575_v34 = vpop.f32.mrb[6].mxu1  ;;  %v5726_v14 = vld [vmem:[#allocation6 + $0xd4] ss:$8 sps:$4 sm:$0xff]  }
 0x231   :  { %v5187_v16 = vadd.f32 %v1575_v34, %v323_v10  ;;  %v1577_v17 = vpop.f32.mrb[7].mxu1  ;;  %v1582_v19 = vmax.f32 %v5185_v13, 0.0  ;;  %v5720_v10 = vld [vmem:[#allocation6 + $0xb4] ss:$8 sps:$4 sm:$0xff]   ;;  %v5721_v13 = vld [vmem:[#allocation6 + $0xc0] ss:$8 sps:$4 sm:$0xff]  }
 0x232   :  { %v5188_v18 = vadd.f32 %v1577_v17, %v327_v11  ;;  %v1583_v20 = vmax.f32 %v5186_v15, 0.0  ;;  %v5718_v11 = vld [vmem:[#allocation6 + $0xb0] ss:$8 sps:$4 sm:$0xff]   ;;  %v5729_v34 = vld [vmem:[#allocation6 + $0xe4] ss:$8 sps:$4 sm:$0xff]  }
 0x233   :  { %v1586_v4 = vmax.f32 %v5187_v16, 0.0  ;;  %v5724_v15 = vld [vmem:[#allocation6 + $0xd0] ss:$8 sps:$4 sm:$0xff]   ;;  %v5727_v16 = vld [vmem:[#allocation6 + $0xe0] ss:$8 sps:$4 sm:$0xff]  }
 0x234   :  { %v1587_v21 = vmax.f32 %v5188_v18, 0.0  ;;  %v5732_v17 = vld [vmem:[#allocation6 + $0xf4] ss:$8 sps:$4 sm:$0xff]   ;;  %v5730_v18 = vld [vmem:[#allocation6 + $0xf0] ss:$8 sps:$4 sm:$0xff]  }
 0x235   :  { %v1590_v51 = vpack.c.bf16 %v1586_v4, %v1582_v19  ;;  %v5733_v19 = vld [vmem:[#allocation7] ss:$16 sps:$4 sm:$0xff]   ;;  %v5735_v4 = vld [vmem:[#allocation7 + $0x4] ss:$16 sps:$4 sm:$0xff]  }
 0x236   :  { %v1591_v22 = vpack.c.bf16 %v1587_v21, %v1583_v20  ;;  %v5738_v20 = vld [vmem:[#allocation7 + $0xc] ss:$16 sps:$4 sm:$0xff]   ;;  %v5741_v21 = vld [vmem:[#allocation7 + $0x24] ss:$16 sps:$4 sm:$0xff]   ;;  %2988 = vmatprep.subr.bf16.mxu0 %v5735_v4  ;;  %v5790_v4 = vld [vmem:[#allocation7 + $0x128] ss:$16 sps:$4 sm:$0xff]  }
 0x238   :  { %2063 = vmatprep.mubr.bf16.mxu0 %v1591_v22  ;;  %v5747_v22 = vld [vmem:[#allocation7 + $0x44] ss:$16 sps:$4 sm:$0xff]  }
 0x239   :  { %2064 = vmatmul.mubr.bf16.vlgmr.msra.gmra.mrb[4].mxu0 %v1590_v51  ;;  %v5739_v51 = vld [vmem:[#allocation7 + $0x20] ss:$16 sps:$4 sm:$0xff]  }
 0x23a   :  { %2989 = vmatpush1.bf16.msra.mxu0 %v5733_v19  ;;  %v5792_v19 = vld [vmem:[#allocation7 + $0x12c] ss:$16 sps:$4 sm:$0xff]  }
 0x23b   :  { %2990 = vmatprep.subr.bf16.mxu0 %v5741_v21  ;;  %v5796_v21 = vld [vmem:[#allocation7 + $0x148] ss:$16 sps:$4 sm:$0xff]  }
 0x23e   :  { %2991 = vmatpush1.bf16.msra.mxu0 %v5739_v51  ;;  %v5804_v51 = vld [vmem:[#allocation7 + $0x16c] ss:$16 sps:$4 sm:$0xff]  }
 0x23f   :  { %2992 = vmatprep.subr.bf16.mxu0 %v5747_v22  ;;  %v5802_v22 = vld [vmem:[#allocation7 + $0x168] ss:$16 sps:$4 sm:$0xff]  }
 0x242   :  { %2993 = vmatpush1.bf16.msra.mxu0 %v5745_v49  ;;  %v5810_v49 = vld [vmem:[#allocation7 + $0x18c] ss:$16 sps:$4 sm:$0xff]  }
 0x243   :  { %2994 = vmatprep.subr.bf16.mxu0 %v5753_v23  ;;  %v5808_v23 = vld [vmem:[#allocation7 + $0x188] ss:$16 sps:$4 sm:$0xff]  }
 0x246   :  { %2995 = vmatpush1.bf16.msra.mxu0 %v5751_v24  ;;  %v5816_v24 = vld [vmem:[#allocation7 + $0x1ac] ss:$16 sps:$4 sm:$0xff]  }
 0x247   :  { %2996 = vmatprep.subr.bf16.mxu0 %v5759_v25  ;;  %v5814_v25 = vld [vmem:[#allocation7 + $0x1a8] ss:$16 sps:$4 sm:$0xff]  }
 0x24a   :  { %2997 = vmatpush1.bf16.msra.mxu0 %v5757_v26  ;;  %v5819_v26 = vld [vmem:[#allocation7 + $0x1c4] ss:$16 sps:$4 sm:$0xff]  }
 0x24b   :  { %2998 = vmatprep.subr.bf16.mxu0 %v5765_v27  ;;  %v5822_v27 = vld [vmem:[#allocation7 + $0x1cc] ss:$16 sps:$4 sm:$0xff]  }
 0x30c   :  { %v2065_v30 = vpop.f32.mrb[4].mxu0 }
 0x30d   :  { %v5189_v31 = vadd.f32 %v2065_v30, %v1661_v28  ;;  %v2067_v32 = vpop.f32.mrb[5].mxu0  ;;  %v5769_v30 = vld [vmem:[#allocation7 + $0xc0] ss:$16 sps:$4 sm:$0xff]  }
 0x30e   :  { %v5190_v33 = vadd.f32 %v2067_v32, %v1665_v29  ;;  %v2069_v35 = vpop.f32.mrb[6].mxu0  ;;  %v5775_v32 = vld [vmem:[#allocation7 + $0xe0] ss:$16 sps:$4 sm:$0xff]  }
 0x30f   :  { %v5191_v36 = vadd.f32 %v2069_v35, %v1661_v28  ;;  %v2071_v37 = vpop.f32.mrb[7].mxu0  ;;  %v2074_v39 = vmax.f32 %v5189_v31, 0.0  ;;  %v5763_v28 = vld [vmem:[#allocation7 + $0xa0] ss:$16 sps:$4 sm:$0xff]   ;;  %v5777_v31 = vld [vmem:[#allocation7 + $0xe4] ss:$16 sps:$4 sm:$0xff]  }
 0x310   :  { %v5192_v38 = vadd.f32 %v2071_v37, %v1665_v29  ;;  %v2075_v41 = vmax.f32 %v5190_v33, 0.0  ;;  %v5771_v29 = vld [vmem:[#allocation7 + $0xc4] ss:$16 sps:$4 sm:$0xff]   ;;  %2999 = vmatpush1.bf16.msra.mxu0 %v5763_v28  ;;  %v5781_v35 = vld [vmem:[#allocation7 + $0x100] ss:$16 sps:$4 sm:$0xff]  }
 0x311   :  { %v2076_v40 = vmax.f32 %v5191_v36, 0.0  ;;  %3000 = vmatprep.subr.bf16.mxu0 %v5771_v29  ;;  %v5783_v33 = vld [vmem:[#allocation7 + $0x104] ss:$16 sps:$4 sm:$0xff]   ;;  %v5787_v37 = vld [vmem:[#allocation7 + $0x120] ss:$16 sps:$4 sm:$0xff]  }
 0x312   :  { %v2077_v42 = vmax.f32 %v5192_v38, 0.0  ;;  %v5789_v36 = vld [vmem:[#allocation7 + $0x124] ss:$16 sps:$4 sm:$0xff]   ;;  %v5817_v28 = vld [vmem:[#allocation7 + $0x1c0] ss:$16 sps:$4 sm:$0xff]  }
 0x313   :  { %v2078_v43 = vpack.c.bf16 %v2076_v40, %v2074_v39  ;;  %v5795_v38 = vld [vmem:[#allocation7 + $0x144] ss:$16 sps:$4 sm:$0xff]   ;;  %v5793_v39 = vld [vmem:[#allocation7 + $0x140] ss:$16 sps:$4 sm:$0xff]   ;;  %v5820_v29 = vld [vmem:[#allocation7 + $0x1c8] ss:$16 sps:$4 sm:$0xff]  }
 0x314   :  { %v2079_v44 = vpack.c.bf16 %v2077_v42, %v2075_v41  ;;  %3001 = vmatpush1.bf16.msra.mxu0 %v5769_v30  ;;  %v5801_v40 = vld [vmem:[#allocation7 + $0x164] ss:$16 sps:$4 sm:$0xff]   ;;  %v5799_v41 = vld [vmem:[#allocation7 + $0x160] ss:$16 sps:$4 sm:$0xff]  }
 0x315   :  { %3002 = vmatprep.subr.bf16.mxu0 %v5777_v31  ;;  %v5807_v42 = vld [vmem:[#allocation7 + $0x184] ss:$16 sps:$4 sm:$0xff]   ;;  %v5828_v31 = vld [vmem:[#allocation7 + $0x1ec] ss:$16 sps:$4 sm:$0xff]  }
 0x316   :  { %2316 = vmatprep.mubr.bf16.mxu1 %v2079_v44  ;;  %v5813_v44 = vld [vmem:[#allocation7 + $0x1a4] ss:$16 sps:$4 sm:$0xff]  }
 0x317   :  { %2317 = vmatmul.mubr.bf16.vlgmr.msra.gmra.mrb[8].mxu1 %v2078_v43  ;;  %v5805_v43 = vld [vmem:[#allocation7 + $0x180] ss:$16 sps:$4 sm:$0xff]   ;;  %v5825_v30 = vld [vmem:[#allocation7 + $0x1e4] ss:$16 sps:$4 sm:$0xff]  }
 0x318   :  { %2534 = vmatpush1.bf16.msra.mxu1 %v5685_v45  ;;  %3003 = vmatpush1.bf16.msra.mxu0 %v5775_v32  ;;  %v5811_v45 = vld [vmem:[#allocation7 + $0x1a0] ss:$16 sps:$4 sm:$0xff]  }
 0x319   :  { %2535 = vmatprep.subr.bf16.mxu1 %v5690_v46  ;;  %3004 = vmatprep.subr.bf16.mxu0 %v5783_v33  ;;  %v2112_v46 = vld [vmem:[%s6666_s6] sm:$0x3]  ;;  %v5826_v33 = vld [vmem:[#allocation7 + $0x1e8] ss:$16 sps:$4 sm:$0xff]  }
 0x31a   :  { %v5823_v32 = vld [vmem:[#allocation7 + $0x1e0] ss:$16 sps:$4 sm:$0xff]  }
 0x31c   :  { %2536 = vmatpush1.bf16.msra.mxu1 %v5688_v52  ;;  %3005 = vmatpush1.bf16.msra.mxu0 %v5781_v35  ;;  %v2117_v52 = vrot.slane %v2112_v46, %v6445_v48  ;;  %v5831_v35 = vld [vmem:[#allocation9 + $0x4] ss:$24 sps:$4 sm:$0xff]  }
 0x31d   :  { %2537 = vmatprep.subr.bf16.mxu1 %v5693_v53  ;;  %3006 = vmatprep.subr.bf16.mxu0 %v5789_v36  ;;  %v5834_v36 = vld [vmem:[#allocation9 + $0xc] ss:$24 sps:$4 sm:$0xff]  }
 0x320   :  { %2538 = vmatpush1.bf16.msra.mxu1 %v5691_v54  ;;  %3007 = vmatpush1.bf16.msra.mxu0 %v5787_v37  ;;  %v2121_v54 = vrot.slane %v2112_v46, %v6453_v50  ;;  %v2361_v37 = vld [vmem:[%s6668_s8] sm:$0x3] }
 0x321   :  { %2539 = vmatprep.subr.bf16.mxu1 %v5696_v55  ;;  %3008 = vmatprep.subr.bf16.mxu0 %v5795_v38  ;;  %v2366_v38 = vrot.slane %v2361_v37, %v6445_v48 }
 0x324   :  { %2540 = vmatpush1.bf16.msra.mxu1 %v5694_v56  ;;  %3009 = vmatpush1.bf16.msra.mxu0 %v5793_v39  ;;  %v2370_v39 = vrot.slane %v2361_v37, %v6453_v50  ;;  %v5897_v37 = vld [vmem:[#allocation9 + $0x214] ss:$24 sps:$4 sm:$0xff]  }
 0x325   :  { %2541 = vmatprep.subr.bf16.mxu1 %v5699_v57  ;;  %3010 = vmatprep.subr.bf16.mxu0 %v5801_v40 }
 0x328   :  { %2542 = vmatpush1.bf16.msra.mxu1 %v5697_v58  ;;  %3011 = vmatpush1.bf16.msra.mxu0 %v5799_v41 }
 0x329   :  { %2543 = vmatprep.subr.bf16.mxu1 %v5702_v59  ;;  %3012 = vmatprep.subr.bf16.mxu0 %v5807_v42 }
 0x32c   :  { %2544 = vmatpush1.bf16.msra.mxu1 %v5700_v60  ;;  %3013 = vmatpush1.bf16.msra.mxu0 %v5805_v43 }
 0x32d   :  { %2545 = vmatprep.subr.bf16.mxu1 %v5705_v61  ;;  %3014 = vmatprep.subr.bf16.mxu0 %v5813_v44 }
 0x330   :  { %2546 = vmatpush1.bf16.msra.mxu1 %v5703_v62  ;;  %3015 = vmatpush1.bf16.msra.mxu0 %v5811_v45 }
 0x331   :  { %2547 = vmatprep.subr.bf16.mxu1 %v5708_v63  ;;  %3016 = vmatprep.subr.bf16.mxu0 %v5819_v26  ;;  %v5877_v26 = vld [vmem:[#allocation9 + $0x180] ss:$24 sps:$4 sm:$0xff]  }
 0x334   :  { %2548 = vmatpush1.bf16.msra.mxu1 %v5706_v0  ;;  %v5736_v0 = vld [vmem:[#allocation7 + $0x8] ss:$16 sps:$4 sm:$0xff]   ;;  %3017 = vmatpush1.bf16.msra.mxu0 %v5817_v28  ;;  %v5885_v28 = vld [vmem:[#allocation9 + $0x1b4] ss:$24 sps:$4 sm:$0xff]  }
 0x335   :  { %2549 = vmatprep.subr.bf16.mxu1 %v5711_v1  ;;  %v5744_v1 = vld [vmem:[#allocation7 + $0x2c] ss:$16 sps:$4 sm:$0xff]   ;;  %3018 = vmatprep.subr.bf16.mxu0 %v5825_v30  ;;  %v5883_v30 = vld [vmem:[#allocation9 + $0x1b0] ss:$24 sps:$4 sm:$0xff]  }
 0x338   :  { %2550 = vmatpush1.bf16.msra.mxu1 %v5709_v2  ;;  %v5742_v2 = vld [vmem:[#allocation7 + $0x28] ss:$16 sps:$4 sm:$0xff]   ;;  %3019 = vmatpush1.bf16.msra.mxu0 %v5823_v32  ;;  %v5891_v32 = vld [vmem:[#allocation9 + $0x1e4] ss:$24 sps:$4 sm:$0xff]  }
 0x339   :  { %2551 = vmatprep.subr.bf16.mxu1 %v5714_v3  ;;  %v5750_v3 = vld [vmem:[#allocation7 + $0x4c] ss:$16 sps:$4 sm:$0xff]   ;;  %4270 = vmatprep.subr.bf16.mxu0 %v5831_v35  ;;  %v5889_v35 = vld [vmem:[#allocation9 + $0x1e0] ss:$24 sps:$4 sm:$0xff]  }
 0x33c   :  { %2552 = vmatpush1.bf16.msra.mxu1 %v5712_v5  ;;  %v5748_v5 = vld [vmem:[#allocation7 + $0x48] ss:$16 sps:$4 sm:$0xff]  }
 0x33d   :  { %2553 = vmatprep.subr.bf16.mxu1 %v5717_v6  ;;  %v5756_v6 = vld [vmem:[#allocation7 + $0x6c] ss:$16 sps:$4 sm:$0xff]  }
 0x340   :  { %2554 = vmatpush1.bf16.msra.mxu1 %v5715_v7  ;;  %v5754_v7 = vld [vmem:[#allocation7 + $0x68] ss:$16 sps:$4 sm:$0xff]  }
 0x341   :  { %2555 = vmatprep.subr.bf16.mxu1 %v5720_v10  ;;  %v5762_v10 = vld [vmem:[#allocation7 + $0x8c] ss:$16 sps:$4 sm:$0xff]  }
 0x344   :  { %2556 = vmatpush1.bf16.msra.mxu1 %v5718_v11  ;;  %v5760_v11 = vld [vmem:[#allocation7 + $0x88] ss:$16 sps:$4 sm:$0xff]  }
 0x345   :  { %2557 = vmatprep.subr.bf16.mxu1 %v5723_v12  ;;  %v5768_v12 = vld [vmem:[#allocation7 + $0xac] ss:$16 sps:$4 sm:$0xff]  }
 0x348   :  { %2558 = vmatpush1.bf16.msra.mxu1 %v5721_v13  ;;  %v5766_v13 = vld [vmem:[#allocation7 + $0xa8] ss:$16 sps:$4 sm:$0xff]  }
 0x349   :  { %2559 = vmatprep.subr.bf16.mxu1 %v5726_v14  ;;  %v5774_v14 = vld [vmem:[#allocation7 + $0xcc] ss:$16 sps:$4 sm:$0xff]  }
 0x34c   :  { %2560 = vmatpush1.bf16.msra.mxu1 %v5724_v15  ;;  %v5772_v15 = vld [vmem:[#allocation7 + $0xc8] ss:$16 sps:$4 sm:$0xff]  }
 0x34d   :  { %2561 = vmatprep.subr.bf16.mxu1 %v5729_v34  ;;  %v5780_v34 = vld [vmem:[#allocation7 + $0xec] ss:$16 sps:$4 sm:$0xff]  }
 0x350   :  { %2562 = vmatpush1.bf16.msra.mxu1 %v5727_v16  ;;  %v5778_v16 = vld [vmem:[#allocation7 + $0xe8] ss:$16 sps:$4 sm:$0xff]  }
 0x351   :  { %2563 = vmatprep.subr.bf16.mxu1 %v5732_v17  ;;  %v5786_v17 = vld [vmem:[#allocation7 + $0x10c] ss:$16 sps:$4 sm:$0xff]  }
 0x354   :  { %2564 = vmatpush1.bf16.msra.mxu1 %v5730_v18  ;;  %v5784_v18 = vld [vmem:[#allocation7 + $0x108] ss:$16 sps:$4 sm:$0xff]  }
 0x355   :  { %3031 = vmatprep.subr.bf16.mxu1 %v5738_v20  ;;  %v5798_v20 = vld [vmem:[#allocation7 + $0x14c] ss:$16 sps:$4 sm:$0xff]  }
 0x3ea   :  { %v2318_v53 = vpop.f32.mrb[8].mxu1 }
 0x3eb   :  { %v2320_v55 = vpop.f32.mrb[9].mxu1  ;;  %v2319_v57 = vadd.f32 %v2318_v53, %v2117_v52 }
 0x3ec   :  { %v2322_v56 = vpop.f32.mrb[10].mxu1  ;;  %v2321_v60 = vadd.f32 %v2320_v55, %v2121_v54 }
 0x3ed   :  { %v2323_v58 = vadd.f32 %v2322_v56, %v2117_v52  ;;  %v2324_v59 = vpop.f32.mrb[11].mxu1 }
 0x3ee   :  { %v2325_v61 = vadd.f32 %v2324_v59, %v2121_v54  ;;  %v5829_v59 = vld [vmem:[#allocation9] ss:$24 sps:$4 sm:$0xff]  }
 0x3ef   :  { %v2327_v62 = vpack.c.bf16 %v2323_v58, %v2319_v57 }
 0x3f0   :  { %v2328_v63 = vpack.c.bf16 %v2325_v61, %v2321_v60  ;;  %v5832_v60 = vld [vmem:[#allocation9 + $0x8] ss:$24 sps:$4 sm:$0xff]   ;;  %v5837_v61 = vld [vmem:[#allocation9 + $0x34] ss:$24 sps:$4 sm:$0xff]  }
 0x3f2   :  { %2565 = vmatprep.mubr.bf16.mxu1 %v2328_v63  ;;  %v5835_v63 = vld [vmem:[#allocation9 + $0x30] ss:$24 sps:$4 sm:$0xff]  }
 0x3f3   :  { %2566 = vmatmul.mubr.bf16.vlgmr.msra.gmra.mrb[12].mxu1 %v2327_v62  ;;  %v5840_v62 = vld [vmem:[#allocation9 + $0x3c] ss:$24 sps:$4 sm:$0xff]  }
 0x3f4   :  { %3032 = vmatpush1.bf16.msra.mxu1 %v5736_v0  ;;  %v5838_v0 = vld [vmem:[#allocation9 + $0x38] ss:$24 sps:$4 sm:$0xff]  }
 0x3f5   :  { %3033 = vmatprep.subr.bf16.mxu1 %v5744_v1  ;;  %v5843_v1 = vld [vmem:[#allocation9 + $0x64] ss:$24 sps:$4 sm:$0xff]  }
 0x3f8   :  { %3034 = vmatpush1.bf16.msra.mxu1 %v5742_v2  ;;  %v5846_v2 = vld [vmem:[#allocation9 + $0x6c] ss:$24 sps:$4 sm:$0xff]  }
 0x3f9   :  { %3035 = vmatprep.subr.bf16.mxu1 %v5750_v3  ;;  %v5841_v3 = vld [vmem:[#allocation9 + $0x60] ss:$24 sps:$4 sm:$0xff]  }
 0x3fc   :  { %3036 = vmatpush1.bf16.msra.mxu1 %v5748_v5  ;;  %v5844_v5 = vld [vmem:[#allocation9 + $0x68] ss:$24 sps:$4 sm:$0xff]  }
 0x3fd   :  { %3037 = vmatprep.subr.bf16.mxu1 %v5756_v6  ;;  %v5849_v6 = vld [vmem:[#allocation9 + $0x94] ss:$24 sps:$4 sm:$0xff]  }
 0x400   :  { %3038 = vmatpush1.bf16.msra.mxu1 %v5754_v7  ;;  %v5852_v7 = vld [vmem:[#allocation9 + $0x9c] ss:$24 sps:$4 sm:$0xff]  }
 0x401   :  { %3039 = vmatprep.subr.bf16.mxu1 %v5762_v10  ;;  %v5847_v10 = vld [vmem:[#allocation9 + $0x90] ss:$24 sps:$4 sm:$0xff]  }
 0x404   :  { %3040 = vmatpush1.bf16.msra.mxu1 %v5760_v11  ;;  %v5850_v11 = vld [vmem:[#allocation9 + $0x98] ss:$24 sps:$4 sm:$0xff]  }
 0x405   :  { %3041 = vmatprep.subr.bf16.mxu1 %v5768_v12  ;;  %v5855_v12 = vld [vmem:[#allocation9 + $0xc4] ss:$24 sps:$4 sm:$0xff]  }
 0x408   :  { %3042 = vmatpush1.bf16.msra.mxu1 %v5766_v13  ;;  %v5858_v13 = vld [vmem:[#allocation9 + $0xcc] ss:$24 sps:$4 sm:$0xff]  }
 0x409   :  { %3043 = vmatprep.subr.bf16.mxu1 %v5774_v14  ;;  %v5853_v14 = vld [vmem:[#allocation9 + $0xc0] ss:$24 sps:$4 sm:$0xff]  }
 0x40c   :  { %3044 = vmatpush1.bf16.msra.mxu1 %v5772_v15  ;;  %v5856_v15 = vld [vmem:[#allocation9 + $0xc8] ss:$24 sps:$4 sm:$0xff]  }
 0x40d   :  { %3045 = vmatprep.subr.bf16.mxu1 %v5780_v34  ;;  %v5861_v34 = vld [vmem:[#allocation9 + $0xf4] ss:$24 sps:$4 sm:$0xff]  }
 0x410   :  { %3046 = vmatpush1.bf16.msra.mxu1 %v5778_v16  ;;  %v5864_v16 = vld [vmem:[#allocation9 + $0xfc] ss:$24 sps:$4 sm:$0xff]  }
 0x411   :  { %3047 = vmatprep.subr.bf16.mxu1 %v5786_v17  ;;  %v5859_v17 = vld [vmem:[#allocation9 + $0xf0] ss:$24 sps:$4 sm:$0xff]  }
 0x414   :  { %3048 = vmatpush1.bf16.msra.mxu1 %v5784_v18  ;;  %v5862_v18 = vld [vmem:[#allocation9 + $0xf8] ss:$24 sps:$4 sm:$0xff]  }
 0x415   :  { %3049 = vmatprep.subr.bf16.mxu1 %v5792_v19  ;;  %v5867_v19 = vld [vmem:[#allocation9 + $0x124] ss:$24 sps:$4 sm:$0xff]  }
 0x418   :  { %3050 = vmatpush1.bf16.msra.mxu1 %v5790_v4  ;;  %v5870_v4 = vld [vmem:[#allocation9 + $0x12c] ss:$24 sps:$4 sm:$0xff]  }
 0x419   :  { %3051 = vmatprep.subr.bf16.mxu1 %v5798_v20  ;;  %v5865_v20 = vld [vmem:[#allocation9 + $0x120] ss:$24 sps:$4 sm:$0xff]  }
 0x41c   :  { %3052 = vmatpush1.bf16.msra.mxu1 %v5796_v21  ;;  %v5868_v21 = vld [vmem:[#allocation9 + $0x128] ss:$24 sps:$4 sm:$0xff]  }
 0x41d   :  { %3053 = vmatprep.subr.bf16.mxu1 %v5804_v51  ;;  %v5873_v51 = vld [vmem:[#allocation9 + $0x154] ss:$24 sps:$4 sm:$0xff]  }
 0x420   :  { %3054 = vmatpush1.bf16.msra.mxu1 %v5802_v22  ;;  %v5876_v22 = vld [vmem:[#allocation9 + $0x15c] ss:$24 sps:$4 sm:$0xff]  }
 0x421   :  { %3055 = vmatprep.subr.bf16.mxu1 %v5810_v49  ;;  %v5871_v49 = vld [vmem:[#allocation9 + $0x150] ss:$24 sps:$4 sm:$0xff]  }
 0x424   :  { %3056 = vmatpush1.bf16.msra.mxu1 %v5808_v23  ;;  %v5874_v23 = vld [vmem:[#allocation9 + $0x158] ss:$24 sps:$4 sm:$0xff]  }
 0x425   :  { %3057 = vmatprep.subr.bf16.mxu1 %v5816_v24  ;;  %v5879_v24 = vld [vmem:[#allocation9 + $0x184] ss:$24 sps:$4 sm:$0xff]  }
 0x428   :  { %3058 = vmatpush1.bf16.msra.mxu1 %v5814_v25  ;;  %v5882_v25 = vld [vmem:[#allocation9 + $0x18c] ss:$24 sps:$4 sm:$0xff]  }
 0x429   :  { %3059 = vmatprep.subr.bf16.mxu1 %v5822_v27  ;;  %v5880_v27 = vld [vmem:[#allocation9 + $0x188] ss:$24 sps:$4 sm:$0xff]  }
 0x42c   :  { %3060 = vmatpush1.bf16.msra.mxu1 %v5820_v29  ;;  %v5888_v29 = vld [vmem:[#allocation9 + $0x1bc] ss:$24 sps:$4 sm:$0xff]  }
 0x42d   :  { %3061 = vmatprep.subr.bf16.mxu1 %v5828_v31  ;;  %v5886_v31 = vld [vmem:[#allocation9 + $0x1b8] ss:$24 sps:$4 sm:$0xff]  }
 0x430   :  { %3062 = vmatpush1.bf16.msra.mxu1 %v5826_v33  ;;  %v5894_v33 = vld [vmem:[#allocation9 + $0x1ec] ss:$24 sps:$4 sm:$0xff]  }
 0x431   :  { %4356 = vmatprep.subr.bf16.mxu1 %v5834_v36  ;;  %v5892_v36 = vld [vmem:[#allocation9 + $0x1e8] ss:$24 sps:$4 sm:$0xff]  }
 0x4c6   :  { %v2567_v40 = vpop.f32.mrb[12].mxu1 }
 0x4c7   :  { %v2568_v41 = vadd.f32 %v2567_v40, %v2366_v38  ;;  %v2569_v42 = vpop.f32.mrb[13].mxu1  ;;  %v5898_v40 = vld [vmem:[#allocation9 + $0x218] ss:$24 sps:$4 sm:$0xff]  }
 0x4c8   :  { %v2570_v43 = vadd.f32 %v2569_v42, %v2370_v39  ;;  %v2571_v44 = vpop.f32.mrb[14].mxu1  ;;  %v5906_v42 = vld [vmem:[#allocation9 + $0x24c] ss:$24 sps:$4 sm:$0xff]  }
 0x4c9   :  { %v2572_v45 = vadd.f32 %v2571_v44, %v2366_v38  ;;  %v2573_v46 = vpop.f32.mrb[15].mxu1  ;;  %v2576_v53 = vmax.f32 %v2568_v41, 0.0  ;;  %v5900_v38 = vld [vmem:[#allocation9 + $0x21c] ss:$24 sps:$4 sm:$0xff]   ;;  %v5904_v44 = vld [vmem:[#allocation9 + $0x248] ss:$24 sps:$4 sm:$0xff]  }
 0x4ca   :  { %v2574_v52 = vadd.f32 %v2573_v46, %v2370_v39  ;;  %v2577_v55 = vmax.f32 %v2570_v43, 0.0  ;;  %v5895_v39 = vld [vmem:[#allocation9 + $0x210] ss:$24 sps:$4 sm:$0xff]   ;;  %v5903_v41 = vld [vmem:[#allocation9 + $0x244] ss:$24 sps:$4 sm:$0xff]  }
 0x4cb   :  { %v2578_v54 = vmax.f32 %v2572_v45, 0.0  ;;  %v5901_v43 = vld [vmem:[#allocation9 + $0x240] ss:$24 sps:$4 sm:$0xff]   ;;  %v5909_v45 = vld [vmem:[#allocation9 + $0x274] ss:$24 sps:$4 sm:$0xff]  }
 0x4cc   :  { %v2579_v56 = vmax.f32 %v2574_v52, 0.0  ;;  %v5912_v46 = vld [vmem:[#allocation9 + $0x27c] ss:$24 sps:$4 sm:$0xff]   ;;  %v5907_v52 = vld [vmem:[#allocation9 + $0x270] ss:$24 sps:$4 sm:$0xff]  }
 0x4cd   :  { %v2580_v57 = vpack.c.bf16 %v2578_v54, %v2576_v53  ;;  %v5910_v53 = vld [vmem:[#allocation9 + $0x278] ss:$24 sps:$4 sm:$0xff]   ;;  %v5915_v54 = vld [vmem:[#allocation9 + $0x2a4] ss:$24 sps:$4 sm:$0xff]  }
 0x4ce   :  { %v2581_v58 = vpack.c.bf16 %v2579_v56, %v2577_v55  ;;  %v5918_v55 = vld [vmem:[#allocation9 + $0x2ac] ss:$24 sps:$4 sm:$0xff]   ;;  %v5913_v56 = vld [vmem:[#allocation9 + $0x2a0] ss:$24 sps:$4 sm:$0xff]  }
 0x4d0   :  { %3020 = vmatprep.mubr.bf16.mxu0 %v2581_v58  ;;  %3063 = vmatprep.mubr.bf16.mxu1 %v2581_v58  ;;  %v5921_v58 = vld [vmem:[#allocation9 + $0x2d4] ss:$24 sps:$4 sm:$0xff]  }
 0x4d1   :  { %3021 = vmatmul.mubr.bf16.vlgmr.msra.gmra.mrb[8].mxu0 %v2580_v57  ;;  %3064 = vmatmul.mubr.bf16.vlgmr.msra.gmra.mrb[16].mxu1 %v2580_v57  ;;  %v5916_v57 = vld [vmem:[#allocation9 + $0x2a8] ss:$24 sps:$4 sm:$0xff]  }
 0x4d2   :  { %4271 = vmatpush1.bf16.msra.mxu0 %v5829_v59  ;;  %4357 = vmatpush1.bf16.msra.mxu1 %v5832_v60  ;;  %v5924_v59 = vld [vmem:[#allocation9 + $0x2dc] ss:$24 sps:$4 sm:$0xff]   ;;  %v5919_v60 = vld [vmem:[#allocation9 + $0x2d0] ss:$24 sps:$4 sm:$0xff]  }
 0x4d3   :  { %4272 = vmatprep.subr.bf16.mxu0 %v5837_v61  ;;  %4358 = vmatprep.subr.bf16.mxu1 %v5840_v62  ;;  %v5922_v61 = vld [vmem:[#allocation9 + $0x2d8] ss:$24 sps:$4 sm:$0xff]   ;;  %v5927_v62 = vld [vmem:[#allocation9 + $0x304] ss:$24 sps:$4 sm:$0xff]  }
 0x4d6   :  { %4273 = vmatpush1.bf16.msra.mxu0 %v5835_v63  ;;  %4359 = vmatpush1.bf16.msra.mxu1 %v5838_v0  ;;  %v5930_v63 = vld [vmem:[#allocation9 + $0x30c] ss:$24 sps:$4 sm:$0xff]   ;;  %v2646_v0 = vld [vmem:[%s6670_s10] sm:$0xf] }
 0x4d7   :  { %4274 = vmatprep.subr.bf16.mxu0 %v5843_v1  ;;  %4360 = vmatprep.subr.bf16.mxu1 %v5846_v2  ;;  %v2651_v1 = vrot.slane %v2646_v0, %v6445_v48  ;;  %v2659_v2 = vrot.slane %v2646_v0, %v6544_v8 }
 0x4da   :  { %4275 = vmatpush1.bf16.msra.mxu0 %v5841_v3  ;;  %4361 = vmatpush1.bf16.msra.mxu1 %v5844_v5  ;;  %v2655_v3 = vrot.slane %v2646_v0, %v6453_v50  ;;  %v2663_v5 = vrot.slane %v2646_v0, %v6547_v9  ;;  %v5969_v0 = vld [vmem:[#allocation9 + $0x454] ss:$24 sps:$4 sm:$0xff]  }
 0x4db   :  { %4276 = vmatprep.subr.bf16.mxu0 %v5849_v6  ;;  %4362 = vmatprep.subr.bf16.mxu1 %v5852_v7 }
 0x4de   :  { %4277 = vmatpush1.bf16.msra.mxu0 %v5847_v10  ;;  %4363 = vmatpush1.bf16.msra.mxu1 %v5850_v11 }
 0x4df   :  { %4278 = vmatprep.subr.bf16.mxu0 %v5855_v12  ;;  %4364 = vmatprep.subr.bf16.mxu1 %v5858_v13 }
 0x4e2   :  { %4279 = vmatpush1.bf16.msra.mxu0 %v5853_v14  ;;  %4365 = vmatpush1.bf16.msra.mxu1 %v5856_v15 }
 0x4e3   :  { %4280 = vmatprep.subr.bf16.mxu0 %v5861_v34  ;;  %4366 = vmatprep.subr.bf16.mxu1 %v5864_v16 }
 0x4e6   :  { %4281 = vmatpush1.bf16.msra.mxu0 %v5859_v17  ;;  %4367 = vmatpush1.bf16.msra.mxu1 %v5862_v18 }
 0x4e7   :  { %4282 = vmatprep.subr.bf16.mxu0 %v5867_v19  ;;  %4368 = vmatprep.subr.bf16.mxu1 %v5870_v4 }
 0x4ea   :  { %4283 = vmatpush1.bf16.msra.mxu0 %v5865_v20  ;;  %4369 = vmatpush1.bf16.msra.mxu1 %v5868_v21 }
 0x4eb   :  { %4284 = vmatprep.subr.bf16.mxu0 %v5873_v51  ;;  %4370 = vmatprep.subr.bf16.mxu1 %v5876_v22 }
 0x4ee   :  { %4285 = vmatpush1.bf16.msra.mxu0 %v5871_v49  ;;  %4371 = vmatpush1.bf16.msra.mxu1 %v5874_v23 }
 0x4ef   :  { %4286 = vmatprep.subr.bf16.mxu0 %v5879_v24  ;;  %4372 = vmatprep.subr.bf16.mxu1 %v5882_v25 }
 0x4f2   :  { %4287 = vmatpush1.bf16.msra.mxu0 %v5877_v26  ;;  %4373 = vmatpush1.bf16.msra.mxu1 %v5880_v27 }
 0x4f3   :  { %4288 = vmatprep.subr.bf16.mxu0 %v5885_v28  ;;  %4374 = vmatprep.subr.bf16.mxu1 %v5888_v29 }
 0x4f6   :  { %4289 = vmatpush1.bf16.msra.mxu0 %v5883_v30  ;;  %4375 = vmatpush1.bf16.msra.mxu1 %v5886_v31 }
 0x4f7   :  { %4290 = vmatprep.subr.bf16.mxu0 %v5891_v32  ;;  %4376 = vmatprep.subr.bf16.mxu1 %v5894_v33  ;;  %v5925_v32 = vld [vmem:[#allocation9 + $0x300] ss:$24 sps:$4 sm:$0xff]  }
 0x4f8   :  { %v5928_v33 = vld [vmem:[#allocation9 + $0x308] ss:$24 sps:$4 sm:$0xff]  }
 0x4fa   :  { %4291 = vmatpush1.bf16.msra.mxu0 %v5889_v35  ;;  %4377 = vmatpush1.bf16.msra.mxu1 %v5892_v36  ;;  %v5933_v35 = vld [vmem:[#allocation9 + $0x334] ss:$24 sps:$4 sm:$0xff]  }
 0x4fb   :  { %4292 = vmatprep.subr.bf16.mxu0 %v5897_v37  ;;  %4378 = vmatprep.subr.bf16.mxu1 %v5900_v38  ;;  %v5936_v36 = vld [vmem:[#allocation9 + $0x33c] ss:$24 sps:$4 sm:$0xff]   ;;  %v5931_v37 = vld [vmem:[#allocation9 + $0x330] ss:$24 sps:$4 sm:$0xff]  }
 0x4fc   :  { %v5934_v38 = vld [vmem:[#allocation9 + $0x338] ss:$24 sps:$4 sm:$0xff]  }
 0x4fe   :  { %4293 = vmatpush1.bf16.msra.mxu0 %v5895_v39  ;;  %4379 = vmatpush1.bf16.msra.mxu1 %v5898_v40  ;;  %v5939_v39 = vld [vmem:[#allocation9 + $0x364] ss:$24 sps:$4 sm:$0xff]  }
 0x4ff   :  { %4294 = vmatprep.subr.bf16.mxu0 %v5903_v41  ;;  %4380 = vmatprep.subr.bf16.mxu1 %v5906_v42  ;;  %v5942_v40 = vld [vmem:[#allocation9 + $0x36c] ss:$24 sps:$4 sm:$0xff]   ;;  %v5937_v41 = vld [vmem:[#allocation9 + $0x360] ss:$24 sps:$4 sm:$0xff]  }
 0x500   :  { %v5940_v42 = vld [vmem:[#allocation9 + $0x368] ss:$24 sps:$4 sm:$0xff]  }
 0x502   :  { %4295 = vmatpush1.bf16.msra.mxu0 %v5901_v43  ;;  %4381 = vmatpush1.bf16.msra.mxu1 %v5904_v44  ;;  %v5945_v43 = vld [vmem:[#allocation9 + $0x394] ss:$24 sps:$4 sm:$0xff]  }
 0x503   :  { %4296 = vmatprep.subr.bf16.mxu0 %v5909_v45  ;;  %4382 = vmatprep.subr.bf16.mxu1 %v5912_v46  ;;  %v5948_v44 = vld [vmem:[#allocation9 + $0x39c] ss:$24 sps:$4 sm:$0xff]   ;;  %v5943_v45 = vld [vmem:[#allocation9 + $0x390] ss:$24 sps:$4 sm:$0xff]  }
 0x504   :  { %v5946_v46 = vld [vmem:[#allocation9 + $0x398] ss:$24 sps:$4 sm:$0xff]  }
 0x506   :  { %4297 = vmatpush1.bf16.msra.mxu0 %v5907_v52  ;;  %4383 = vmatpush1.bf16.msra.mxu1 %v5910_v53  ;;  %v5951_v52 = vld [vmem:[#allocation9 + $0x3c4] ss:$24 sps:$4 sm:$0xff]  }
 0x507   :  { %4298 = vmatprep.subr.bf16.mxu0 %v5915_v54  ;;  %4384 = vmatprep.subr.bf16.mxu1 %v5918_v55  ;;  %v5954_v53 = vld [vmem:[#allocation9 + $0x3cc] ss:$24 sps:$4 sm:$0xff]   ;;  %v5949_v54 = vld [vmem:[#allocation9 + $0x3c0] ss:$24 sps:$4 sm:$0xff]  }
 0x508   :  { %v5952_v55 = vld [vmem:[#allocation9 + $0x3c8] ss:$24 sps:$4 sm:$0xff]  }
 0x50a   :  { %4299 = vmatpush1.bf16.msra.mxu0 %v5913_v56  ;;  %4385 = vmatpush1.bf16.msra.mxu1 %v5916_v57  ;;  %v5957_v56 = vld [vmem:[#allocation9 + $0x3f4] ss:$24 sps:$4 sm:$0xff]  }
 0x50b   :  { %4300 = vmatprep.subr.bf16.mxu0 %v5921_v58  ;;  %4386 = vmatprep.subr.bf16.mxu1 %v5924_v59  ;;  %v5960_v57 = vld [vmem:[#allocation9 + $0x3fc] ss:$24 sps:$4 sm:$0xff]   ;;  %v5955_v58 = vld [vmem:[#allocation9 + $0x3f0] ss:$24 sps:$4 sm:$0xff]  }
 0x50c   :  { %v5958_v59 = vld [vmem:[#allocation9 + $0x3f8] ss:$24 sps:$4 sm:$0xff]  }
 0x50e   :  { %4301 = vmatpush1.bf16.msra.mxu0 %v5919_v60  ;;  %4387 = vmatpush1.bf16.msra.mxu1 %v5922_v61  ;;  %v5963_v60 = vld [vmem:[#allocation9 + $0x424] ss:$24 sps:$4 sm:$0xff]  }
 0x50f   :  { %4313 = vmatprep.subr.bf16.mxu0 %v5927_v62  ;;  %4399 = vmatprep.subr.bf16.mxu1 %v5930_v63  ;;  %v5966_v61 = vld [vmem:[#allocation9 + $0x42c] ss:$24 sps:$4 sm:$0xff]   ;;  %v5961_v62 = vld [vmem:[#allocation9 + $0x420] ss:$24 sps:$4 sm:$0xff]  }
 0x510   :  { %v5964_v63 = vld [vmem:[#allocation9 + $0x428] ss:$24 sps:$4 sm:$0xff]  }
 0x5a4   :  { %v3022_v6 = vpop.f32.mrb[8].mxu0  ;;  %v3065_v7 = vpop.f32.mrb[16].mxu1 }
 0x5a5   :  { %v3023_v10 = vadd.f32 %v3022_v6, %v2651_v1  ;;  %v3066_v11 = vadd.f32 %v3065_v7, %v2659_v2  ;;  %v3024_v12 = vpop.f32.mrb[9].mxu0  ;;  %v3067_v13 = vpop.f32.mrb[17].mxu1  ;;  %v5978_v6 = vld [vmem:[#allocation9 + $0x48c] ss:$24 sps:$4 sm:$0xff]   ;;  %v5973_v7 = vld [vmem:[#allocation9 + $0x480] ss:$24 sps:$4 sm:$0xff]  }
 0x5a6   :  { %v3025_v14 = vadd.f32 %v3024_v12, %v2655_v3  ;;  %v3068_v15 = vadd.f32 %v3067_v13, %v2663_v5  ;;  %v3026_v34 = vpop.f32.mrb[10].mxu0  ;;  %v3069_v16 = vpop.f32.mrb[18].mxu1  ;;  %v5984_v12 = vld [vmem:[#allocation9 + $0x4bc] ss:$24 sps:$4 sm:$0xff]   ;;  %v5979_v13 = vld [vmem:[#allocation9 + $0x4b0] ss:$24 sps:$4 sm:$0xff]  }
 0x5a7   :  { %v3027_v17 = vadd.f32 %v3026_v34, %v2651_v1  ;;  %v3070_v18 = vadd.f32 %v3069_v16, %v2659_v2  ;;  %v3028_v19 = vpop.f32.mrb[11].mxu0  ;;  %v3071_v4 = vpop.f32.mrb[19].mxu1  ;;  %v3074_v51 = vmax.f32 %v3023_v10, 0.0  ;;  %v3076_v22 = vmax.f32 %v3066_v11, 0.0  ;;  %v5972_v1 = vld [vmem:[#allocation9 + $0x45c] ss:$24 sps:$4 sm:$0xff]  }
 0x5a8   :  { %v3029_v20 = vadd.f32 %v3028_v19, %v2655_v3  ;;  %v3072_v21 = vadd.f32 %v3071_v4, %v2663_v5  ;;  %v3075_v24 = vmax.f32 %v3025_v14, 0.0  ;;  %v3077_v25 = vmax.f32 %v3068_v15, 0.0  ;;  %v5967_v2 = vld [vmem:[#allocation9 + $0x450] ss:$24 sps:$4 sm:$0xff]   ;;  %v5975_v5 = vld [vmem:[#allocation9 + $0x484] ss:$24 sps:$4 sm:$0xff]  }
 0x5a9   :  { %v3078_v49 = vmax.f32 %v3027_v17, 0.0  ;;  %v3080_v23 = vmax.f32 %v3070_v18, 0.0  ;;  %v5970_v3 = vld [vmem:[#allocation9 + $0x458] ss:$24 sps:$4 sm:$0xff]   ;;  %v5976_v10 = vld [vmem:[#allocation9 + $0x488] ss:$24 sps:$4 sm:$0xff]  }
 0x5aa   :  { %v3079_v26 = vmax.f32 %v3029_v20, 0.0  ;;  %v3081_v27 = vmax.f32 %v3072_v21, 0.0  ;;  %v5981_v11 = vld [vmem:[#allocation9 + $0x4b4] ss:$24 sps:$4 sm:$0xff]   ;;  %v5982_v14 = vld [vmem:[#allocation9 + $0x4b8] ss:$24 sps:$4 sm:$0xff]  }
 0x5ab   :  { %v6587_v28 = vpack.c.bf16 %v3078_v49, %v3074_v51  ;;  %v6589_v29 = vpack.c.bf16 %v3080_v23, %v3076_v22  ;;  %v5987_v15 = vld [vmem:[#allocation9 + $0x4e4] ss:$24 sps:$4 sm:$0xff]   ;;  %v5985_v16 = vld [vmem:[#allocation9 + $0x4e0] ss:$24 sps:$4 sm:$0xff]   ;;  %v5993_v18 = vld [vmem:[#allocation9 + $0x514] ss:$24 sps:$4 sm:$0xff]  }
 0x5ac   :  { %v6591_v30 = vpack.c.bf16 %v3079_v26, %v3075_v24  ;;  %v6593_v31 = vpack.c.bf16 %v3081_v27, %v3077_v25  ;;  %v5990_v34 = vld [vmem:[#allocation9 + $0x4ec] ss:$24 sps:$4 sm:$0xff]   ;;  %v5988_v17 = vld [vmem:[#allocation9 + $0x4e8] ss:$24 sps:$4 sm:$0xff]   ;;  %v5996_v19 = vld [vmem:[#allocation9 + $0x51c] ss:$24 sps:$4 sm:$0xff]  }
 0x5ad   :  { %v5991_v4 = vld [vmem:[#allocation9 + $0x510] ss:$24 sps:$4 sm:$0xff]   ;;  %v5999_v21 = vld [vmem:[#allocation9 + $0x544] ss:$24 sps:$4 sm:$0xff]   ;;  %v5997_v22 = vld [vmem:[#allocation9 + $0x540] ss:$24 sps:$4 sm:$0xff]  }
 0x5ae   :  { %4302 = vmatprep.mubr.bf16.mxu0 %v6591_v30  ;;  %4388 = vmatprep.mubr.bf16.mxu1 %v6591_v30  ;;  %v5994_v20 = vld [vmem:[#allocation9 + $0x518] ss:$24 sps:$4 sm:$0xff]   ;;  %v6002_v51 = vld [vmem:[#allocation9 + $0x54c] ss:$24 sps:$4 sm:$0xff]   ;;  %v6000_v49 = vld [vmem:[#allocation9 + $0x548] ss:$24 sps:$4 sm:$0xff]  }
 0x5af   :  { %4303 = vmatmul.mubr.bf16.vlgmr.msra.gmra.mrb[12].mxu0 %v6587_v28  ;;  %4389 = vmatmul.mubr.bf16.vlgmr.msra.gmra.mrb[20].mxu1 %v6587_v28  ;;  %v6005_v23 = vld [vmem:[#allocation9 + $0x574] ss:$24 sps:$4 sm:$0xff]   ;;  %v6003_v25 = vld [vmem:[#allocation9 + $0x570] ss:$24 sps:$4 sm:$0xff]   ;;  %v6011_v27 = vld [vmem:[#allocation9 + $0x5a4] ss:$24 sps:$4 sm:$0xff]  }
 0x5b0   :  { %4314 = vmatpush1.bf16.msra.mxu0 %v5925_v32  ;;  %4400 = vmatpush1.bf16.msra.mxu1 %v5928_v33  ;;  %v6008_v24 = vld [vmem:[#allocation9 + $0x57c] ss:$24 sps:$4 sm:$0xff]   ;;  %v6006_v26 = vld [vmem:[#allocation9 + $0x578] ss:$24 sps:$4 sm:$0xff]   ;;  %v6014_v32 = vld [vmem:[#allocation9 + $0x5ac] ss:$24 sps:$4 sm:$0xff]  }
 0x5b1   :  { %4345 = vmatprep.mubr.bf16.mxu0 %v6593_v31  ;;  %4431 = vmatprep.mubr.bf16.mxu1 %v6593_v31  ;;  %v6009_v33 = vld [vmem:[#allocation9 + $0x5a0] ss:$24 sps:$4 sm:$0xff]  }
 0x5b2   :  { %4315 = vmatprep.subr.bf16.mxu0 %v5933_v35  ;;  %4401 = vmatprep.subr.bf16.mxu1 %v5936_v36  ;;  %v6012_v35 = vld [vmem:[#allocation9 + $0x5a8] ss:$24 sps:$4 sm:$0xff]   ;;  %v6017_v36 = vld [vmem:[#allocation9 + $0x5d4] ss:$24 sps:$4 sm:$0xff]  }
 0x5b4   :  { %4316 = vmatpush1.bf16.msra.mxu0 %v5931_v37  ;;  %4402 = vmatpush1.bf16.msra.mxu1 %v5934_v38  ;;  %v6020_v37 = vld [vmem:[#allocation9 + $0x5dc] ss:$24 sps:$4 sm:$0xff]   ;;  %v6015_v38 = vld [vmem:[#allocation9 + $0x5d0] ss:$24 sps:$4 sm:$0xff]  }
 0x5b5   :  { %4317 = vmatprep.subr.bf16.mxu0 %v5939_v39  ;;  %4403 = vmatprep.subr.bf16.mxu1 %v5942_v40  ;;  %v6018_v39 = vld [vmem:[#allocation9 + $0x5d8] ss:$24 sps:$4 sm:$0xff]   ;;  %v6023_v40 = vld [vmem:[#allocation9 + $0x14] ss:$24 sps:$4 sm:$0xff]  }
 0x5b8   :  { %4318 = vmatpush1.bf16.msra.mxu0 %v5937_v41  ;;  %4404 = vmatpush1.bf16.msra.mxu1 %v5940_v42  ;;  %v6021_v41 = vld [vmem:[#allocation9 + $0x10] ss:$24 sps:$4 sm:$0xff]   ;;  %v6026_v42 = vld [vmem:[#allocation9 + $0x44] ss:$24 sps:$4 sm:$0xff]  }
 0x5b9   :  { %4319 = vmatprep.subr.bf16.mxu0 %v5945_v43  ;;  %4405 = vmatprep.subr.bf16.mxu1 %v5948_v44  ;;  %v6024_v43 = vld [vmem:[#allocation9 + $0x40] ss:$24 sps:$4 sm:$0xff]   ;;  %v6029_v44 = vld [vmem:[#allocation9 + $0x74] ss:$24 sps:$4 sm:$0xff]  }
 0x5bc   :  { %4320 = vmatpush1.bf16.msra.mxu0 %v5943_v45  ;;  %4406 = vmatpush1.bf16.msra.mxu1 %v5946_v46  ;;  %v6027_v45 = vld [vmem:[#allocation9 + $0x70] ss:$24 sps:$4 sm:$0xff]   ;;  %v6032_v46 = vld [vmem:[#allocation9 + $0xa4] ss:$24 sps:$4 sm:$0xff]  }
 0x5bd   :  { %4321 = vmatprep.subr.bf16.mxu0 %v5951_v52  ;;  %4407 = vmatprep.subr.bf16.mxu1 %v5954_v53  ;;  %v6030_v52 = vld [vmem:[#allocation9 + $0xa0] ss:$24 sps:$4 sm:$0xff]   ;;  %v6035_v53 = vld [vmem:[#allocation9 + $0xd4] ss:$24 sps:$4 sm:$0xff]  }
 0x5c0   :  { %4322 = vmatpush1.bf16.msra.mxu0 %v5949_v54  ;;  %4408 = vmatpush1.bf16.msra.mxu1 %v5952_v55  ;;  %v6033_v54 = vld [vmem:[#allocation9 + $0xd0] ss:$24 sps:$4 sm:$0xff]   ;;  %v6038_v55 = vld [vmem:[#allocation9 + $0x104] ss:$24 sps:$4 sm:$0xff]  }
 0x5c1   :  { %4323 = vmatprep.subr.bf16.mxu0 %v5957_v56  ;;  %4409 = vmatprep.subr.bf16.mxu1 %v5960_v57  ;;  %v6036_v56 = vld [vmem:[#allocation9 + $0x100] ss:$24 sps:$4 sm:$0xff]   ;;  %v6041_v57 = vld [vmem:[#allocation9 + $0x134] ss:$24 sps:$4 sm:$0xff]  }
 0x5c4   :  { %4324 = vmatpush1.bf16.msra.mxu0 %v5955_v58  ;;  %4410 = vmatpush1.bf16.msra.mxu1 %v5958_v59  ;;  %v6044_v58 = vld [vmem:[#allocation9 + $0x164] ss:$24 sps:$4 sm:$0xff]   ;;  %v6042_v59 = vld [vmem:[#allocation9 + $0x160] ss:$24 sps:$4 sm:$0xff]  }
 0x5c5   :  { %4325 = vmatprep.subr.bf16.mxu0 %v5963_v60  ;;  %4411 = vmatprep.subr.bf16.mxu1 %v5966_v61  ;;  %v6047_v60 = vld [vmem:[#allocation9 + $0x194] ss:$24 sps:$4 sm:$0xff]   ;;  %v6045_v61 = vld [vmem:[#allocation9 + $0x190] ss:$24 sps:$4 sm:$0xff]  }
 0x5c8   :  { %4326 = vmatpush1.bf16.msra.mxu0 %v5961_v62  ;;  %4412 = vmatpush1.bf16.msra.mxu1 %v5964_v63  ;;  %v6050_v62 = vld [vmem:[#allocation9 + $0x1c4] ss:$24 sps:$4 sm:$0xff]   ;;  %v6048_v63 = vld [vmem:[#allocation9 + $0x1c0] ss:$24 sps:$4 sm:$0xff]  }
 0x5c9   :  { %4327 = vmatprep.subr.bf16.mxu0 %v5969_v0  ;;  %4413 = vmatprep.subr.bf16.mxu1 %v5972_v1  ;;  %v6053_v0 = vld [vmem:[#allocation9 + $0x1f4] ss:$24 sps:$4 sm:$0xff]   ;;  %v6051_v1 = vld [vmem:[#allocation9 + $0x1f0] ss:$24 sps:$4 sm:$0xff]  }
 0x5cc   :  { %4328 = vmatpush1.bf16.msra.mxu0 %v5967_v2  ;;  %4414 = vmatpush1.bf16.msra.mxu1 %v5970_v3  ;;  %v6056_v2 = vld [vmem:[#allocation9 + $0x224] ss:$24 sps:$4 sm:$0xff]   ;;  %v6054_v3 = vld [vmem:[#allocation9 + $0x220] ss:$24 sps:$4 sm:$0xff]  }
 0x5cd   :  { %4329 = vmatprep.subr.bf16.mxu0 %v5975_v5  ;;  %4415 = vmatprep.subr.bf16.mxu1 %v5978_v6  ;;  %v6059_v5 = vld [vmem:[#allocation9 + $0x254] ss:$24 sps:$4 sm:$0xff]   ;;  %v6057_v6 = vld [vmem:[#allocation9 + $0x250] ss:$24 sps:$4 sm:$0xff]  }
 0x5d0   :  { %4330 = vmatpush1.bf16.msra.mxu0 %v5973_v7  ;;  %4416 = vmatpush1.bf16.msra.mxu1 %v5976_v10  ;;  %v6062_v7 = vld [vmem:[#allocation9 + $0x284] ss:$24 sps:$4 sm:$0xff]   ;;  %v6060_v10 = vld [vmem:[#allocation9 + $0x280] ss:$24 sps:$4 sm:$0xff]  }
 0x5d1   :  { %4331 = vmatprep.subr.bf16.mxu0 %v5981_v11  ;;  %4417 = vmatprep.subr.bf16.mxu1 %v5984_v12  ;;  %v6065_v11 = vld [vmem:[#allocation9 + $0x2b4] ss:$24 sps:$4 sm:$0xff]   ;;  %v6063_v12 = vld [vmem:[#allocation9 + $0x2b0] ss:$24 sps:$4 sm:$0xff]  }
 0x5d4   :  { %4332 = vmatpush1.bf16.msra.mxu0 %v5979_v13  ;;  %4418 = vmatpush1.bf16.msra.mxu1 %v5982_v14  ;;  %v6068_v13 = vld [vmem:[#allocation9 + $0x2e4] ss:$24 sps:$4 sm:$0xff]   ;;  %v6066_v14 = vld [vmem:[#allocation9 + $0x2e0] ss:$24 sps:$4 sm:$0xff]  }
 0x5d5   :  { %4333 = vmatprep.subr.bf16.mxu0 %v5987_v15  ;;  %4419 = vmatprep.subr.bf16.mxu1 %v5990_v34  ;;  %v6071_v15 = vld [vmem:[#allocation9 + $0x314] ss:$24 sps:$4 sm:$0xff]   ;;  %v6069_v34 = vld [vmem:[#allocation9 + $0x310] ss:$24 sps:$4 sm:$0xff]  }
 0x5d8   :  { %4334 = vmatpush1.bf16.msra.mxu0 %v5985_v16  ;;  %4420 = vmatpush1.bf16.msra.mxu1 %v5988_v17  ;;  %v6074_v16 = vld [vmem:[#allocation9 + $0x344] ss:$24 sps:$4 sm:$0xff]   ;;  %v6072_v17 = vld [vmem:[#allocation9 + $0x340] ss:$24 sps:$4 sm:$0xff]  }
 0x5d9   :  { %4335 = vmatprep.subr.bf16.mxu0 %v5993_v18  ;;  %4421 = vmatprep.subr.bf16.mxu1 %v5996_v19  ;;  %v6077_v18 = vld [vmem:[#allocation9 + $0x374] ss:$24 sps:$4 sm:$0xff]   ;;  %v6075_v19 = vld [vmem:[#allocation9 + $0x370] ss:$24 sps:$4 sm:$0xff]  }
 0x5dc   :  { %4336 = vmatpush1.bf16.msra.mxu0 %v5991_v4  ;;  %4422 = vmatpush1.bf16.msra.mxu1 %v5994_v20  ;;  %v6080_v4 = vld [vmem:[#allocation9 + $0x3a4] ss:$24 sps:$4 sm:$0xff]   ;;  %v6078_v20 = vld [vmem:[#allocation9 + $0x3a0] ss:$24 sps:$4 sm:$0xff]  }
 0x5dd   :  { %4337 = vmatprep.subr.bf16.mxu0 %v5999_v21  ;;  %4423 = vmatprep.subr.bf16.mxu1 %v6002_v51  ;;  %v6083_v21 = vld [vmem:[#allocation9 + $0x3d4] ss:$24 sps:$4 sm:$0xff]   ;;  %v6081_v51 = vld [vmem:[#allocation9 + $0x3d0] ss:$24 sps:$4 sm:$0xff]  }
 0x5e0   :  { %4338 = vmatpush1.bf16.msra.mxu0 %v5997_v22  ;;  %4424 = vmatpush1.bf16.msra.mxu1 %v6000_v49  ;;  %v6086_v22 = vld [vmem:[#allocation9 + $0x404] ss:$24 sps:$4 sm:$0xff]   ;;  %v6089_v49 = vld [vmem:[#allocation9 + $0x434] ss:$24 sps:$4 sm:$0xff]  }
 0x5e1   :  { %4339 = vmatprep.subr.bf16.mxu0 %v6005_v23  ;;  %4425 = vmatprep.subr.bf16.mxu1 %v6008_v24  ;;  %v6092_v23 = vld [vmem:[#allocation9 + $0x464] ss:$24 sps:$4 sm:$0xff]   ;;  %v6090_v24 = vld [vmem:[#allocation9 + $0x460] ss:$24 sps:$4 sm:$0xff]  }
 0x5e4   :  { %4340 = vmatpush1.bf16.msra.mxu0 %v6003_v25  ;;  %4426 = vmatpush1.bf16.msra.mxu1 %v6006_v26  ;;  %v6095_v25 = vld [vmem:[#allocation9 + $0x494] ss:$24 sps:$4 sm:$0xff]   ;;  %v6093_v26 = vld [vmem:[#allocation9 + $0x490] ss:$24 sps:$4 sm:$0xff]  }
 0x5e5   :  { %4341 = vmatprep.subr.bf16.mxu0 %v6011_v27  ;;  %4427 = vmatprep.subr.bf16.mxu1 %v6014_v32  ;;  %v6098_v27 = vld [vmem:[#allocation9 + $0x4c4] ss:$24 sps:$4 sm:$0xff]   ;;  %v6096_v32 = vld [vmem:[#allocation9 + $0x4c0] ss:$24 sps:$4 sm:$0xff]  }
 0x5e8   :  { %4342 = vmatpush1.bf16.msra.mxu0 %v6009_v33  ;;  %4428 = vmatpush1.bf16.msra.mxu1 %v6012_v35  ;;  %v6101_v33 = vld [vmem:[#allocation9 + $0x4f4] ss:$24 sps:$4 sm:$0xff]   ;;  %v6099_v35 = vld [vmem:[#allocation9 + $0x4f0] ss:$24 sps:$4 sm:$0xff]  }
 0x5e9   :  { %4343 = vmatprep.subr.bf16.mxu0 %v6017_v36  ;;  %4429 = vmatprep.subr.bf16.mxu1 %v6020_v37  ;;  %v6104_v36 = vld [vmem:[#allocation9 + $0x524] ss:$24 sps:$4 sm:$0xff]   ;;  %v6102_v37 = vld [vmem:[#allocation9 + $0x520] ss:$24 sps:$4 sm:$0xff]  }
 0x5ec   :  { %4344 = vmatpush1.bf16.msra.mxu0 %v6015_v38  ;;  %4430 = vmatpush1.bf16.msra.mxu1 %v6018_v39  ;;  %v6107_v38 = vld [vmem:[#allocation9 + $0x554] ss:$24 sps:$4 sm:$0xff]   ;;  %v6105_v39 = vld [vmem:[#allocation9 + $0x550] ss:$24 sps:$4 sm:$0xff]  }
 0x5ed   :  { %4442 = vmatprep.subr.bf16.mxu0 %v6023_v40  ;;  %v6110_v40 = vld [vmem:[#allocation9 + $0x584] ss:$24 sps:$4 sm:$0xff]  }
 0x5ef   :  { %4346 = vmatmul.mubr.bf16.vlgmr.msra.gmra.mrb[12].mxu0 %v6589_v29  ;;  %4432 = vmatmul.mubr.bf16.vlgmr.msra.gmra.mrb[20].mxu1 %v6589_v29 }
 0x5f0   :  { %4443 = vmatpush1.bf16.msra.mxu0 %v6021_v41  ;;  %4474 = vmatprep.mubr.bf16.mxu0 %v6591_v30  ;;  %v6039_v30 = vld [vmem:[#allocation9 + $0x130] ss:$24 sps:$4 sm:$0xff]   ;;  %v6108_v41 = vld [vmem:[#allocation9 + $0x580] ss:$24 sps:$4 sm:$0xff]  }
 0x5f1   :  { %4444 = vmatprep.subr.bf16.mxu0 %v6026_v42  ;;  %v6113_v42 = vld [vmem:[#allocation9 + $0x5b4] ss:$24 sps:$4 sm:$0xff]  }
 0x5f4   :  { %4445 = vmatpush1.bf16.msra.mxu0 %v6024_v43  ;;  %v6111_v43 = vld [vmem:[#allocation9 + $0x5b0] ss:$24 sps:$4 sm:$0xff]  }
 0x5f5   :  { %4446 = vmatprep.subr.bf16.mxu0 %v6029_v44  ;;  %v6116_v44 = vld [vmem:[#allocation9 + $0x5e4] ss:$24 sps:$4 sm:$0xff]  }
 0x5f8   :  { %4447 = vmatpush1.bf16.msra.mxu0 %v6027_v45  ;;  %v6114_v45 = vld [vmem:[#allocation9 + $0x5e0] ss:$24 sps:$4 sm:$0xff]  }
 0x5f9   :  { %4448 = vmatprep.subr.bf16.mxu0 %v6032_v46  ;;  %v6610_v46 = vld [vmem:[%s6672_s12] sm:$0x3f] }
 0x5fc   :  { %4449 = vmatpush1.bf16.msra.mxu0 %v6030_v52  ;;  %v3283_v52 = vrot.slane %v6610_v46, %v6445_v48 }
 0x5fd   :  { %4450 = vmatprep.subr.bf16.mxu0 %v6035_v53  ;;  %v3291_v53 = vrot.slane %v6610_v46, %v6544_v8 }
 0x600   :  { %4451 = vmatpush1.bf16.msra.mxu0 %v6033_v54  ;;  %v3287_v54 = vrot.slane %v6610_v46, %v6453_v50 }
 0x601   :  { %4452 = vmatprep.subr.bf16.mxu0 %v6038_v55  ;;  %v3295_v55 = vrot.slane %v6610_v46, %v6547_v9 }
 0x604   :  { %4453 = vmatpush1.bf16.msra.mxu0 %v6036_v56 }
 0x605   :  { %4454 = vmatprep.subr.bf16.mxu0 %v6041_v57 }
 0x608   :  { %4455 = vmatpush1.bf16.msra.mxu0 %v6039_v30 }
 0x609   :  { %4456 = vmatprep.subr.bf16.mxu0 %v6044_v58 }
 0x60c   :  { %4457 = vmatpush1.bf16.msra.mxu0 %v6042_v59 }
 0x60d   :  { %4458 = vmatprep.subr.bf16.mxu0 %v6047_v60 }
 0x610   :  { %4459 = vmatpush1.bf16.msra.mxu0 %v6045_v61 }
 0x611   :  { %4460 = vmatprep.subr.bf16.mxu0 %v6050_v62 }
 0x614   :  { %4461 = vmatpush1.bf16.msra.mxu0 %v6048_v63 }
 0x615   :  { %4462 = vmatprep.subr.bf16.mxu0 %v6053_v0 }
 0x618   :  { %4463 = vmatpush1.bf16.msra.mxu0 %v6051_v1 }
 0x619   :  { %4464 = vmatprep.subr.bf16.mxu0 %v6056_v2 }
 0x61c   :  { %4465 = vmatpush1.bf16.msra.mxu0 %v6054_v3 }
 0x61d   :  { %4466 = vmatprep.subr.bf16.mxu0 %v6059_v5 }
 0x620   :  { %4467 = vmatpush1.bf16.msra.mxu0 %v6057_v6 }
 0x621   :  { %4468 = vmatprep.subr.bf16.mxu0 %v6062_v7 }
 0x624   :  { %4469 = vmatpush1.bf16.msra.mxu0 %v6060_v10 }
 0x625   :  { %4470 = vmatprep.subr.bf16.mxu0 %v6065_v11 }
 0x628   :  { %4471 = vmatpush1.bf16.msra.mxu0 %v6063_v12 }
 0x629   :  { %4472 = vmatprep.subr.bf16.mxu0 %v6068_v13 }
 0x62c   :  { %4473 = vmatpush1.bf16.msra.mxu0 %v6066_v14 }
 0x62d   :  { %4485 = vmatprep.subr.bf16.mxu0 %v6071_v15 }
 0x62f   :  { %4475 = vmatmul.mubr.bf16.vlgmr.msra.gmra.mrb[16].mxu0 %v6587_v28  ;;  %v6084_v28 = vld [vmem:[#allocation9 + $0x400] ss:$24 sps:$4 sm:$0xff]  }
 0x630   :  { %4486 = vmatpush1.bf16.msra.mxu0 %v6069_v34  ;;  %4517 = vmatprep.mubr.bf16.mxu0 %v6593_v31  ;;  %v6087_v31 = vld [vmem:[#allocation9 + $0x430] ss:$24 sps:$4 sm:$0xff]  }
 0x631   :  { %4487 = vmatprep.subr.bf16.mxu0 %v6074_v16 }
 0x634   :  { %4488 = vmatpush1.bf16.msra.mxu0 %v6072_v17 }
 0x635   :  { %4489 = vmatprep.subr.bf16.mxu0 %v6077_v18 }
 0x638   :  { %4490 = vmatpush1.bf16.msra.mxu0 %v6075_v19 }
 0x639   :  { %4491 = vmatprep.subr.bf16.mxu0 %v6080_v4 }
 0x63c   :  { %4492 = vmatpush1.bf16.msra.mxu0 %v6078_v20 }
 0x63d   :  { %4493 = vmatprep.subr.bf16.mxu0 %v6083_v21 }
 0x640   :  { %4494 = vmatpush1.bf16.msra.mxu0 %v6081_v51 }
 0x641   :  { %4495 = vmatprep.subr.bf16.mxu0 %v6086_v22 }
 0x644   :  { %4496 = vmatpush1.bf16.msra.mxu0 %v6084_v28 }
 0x645   :  { %4497 = vmatprep.subr.bf16.mxu0 %v6089_v49 }
 0x648   :  { %4498 = vmatpush1.bf16.msra.mxu0 %v6087_v31 }
 0x649   :  { %4499 = vmatprep.subr.bf16.mxu0 %v6092_v23 }
 0x64c   :  { %4500 = vmatpush1.bf16.msra.mxu0 %v6090_v24 }
 0x64d   :  { %4501 = vmatprep.subr.bf16.mxu0 %v6095_v25 }
 0x650   :  { %4502 = vmatpush1.bf16.msra.mxu0 %v6093_v26 }
 0x651   :  { %4503 = vmatprep.subr.bf16.mxu0 %v6098_v27 }
 0x654   :  { %4504 = vmatpush1.bf16.msra.mxu0 %v6096_v32 }
 0x655   :  { %4505 = vmatprep.subr.bf16.mxu0 %v6101_v33 }
 0x658   :  { %4506 = vmatpush1.bf16.msra.mxu0 %v6099_v35 }
 0x659   :  { %4507 = vmatprep.subr.bf16.mxu0 %v6104_v36  ;;  %v3298_v36 = vsub.s32 4, %v6442_v47 }
 0x65c   :  { %4508 = vmatpush1.bf16.msra.mxu0 %v6102_v37  ;;  %v3302_v37 = vsub.s32 5, %v6442_v47 }
 0x65d   :  { %4509 = vmatprep.subr.bf16.mxu0 %v6107_v38  ;;  %v3299_v38 = vrot.slane %v6610_v46, %v3298_v36 }
 0x660   :  { %4510 = vmatpush1.bf16.msra.mxu0 %v6105_v39  ;;  %v3303_v39 = vrot.slane %v6610_v46, %v3302_v37 }
 0x661   :  { %4511 = vmatprep.subr.bf16.mxu0 %v6110_v40 }
 0x664   :  { %4512 = vmatpush1.bf16.msra.mxu0 %v6108_v41 }
 0x665   :  { %4513 = vmatprep.subr.bf16.mxu0 %v6113_v42 }
 0x668   :  { %4514 = vmatpush1.bf16.msra.mxu0 %v6111_v43 }
 0x669   :  { %4515 = vmatprep.subr.bf16.mxu0 %v6116_v44 }
 0x66c   :  { %4516 = vmatpush1.bf16.msra.mxu0 %v6114_v45 }
 0x66f   :  { %4518 = vmatmul.mubr.bf16.vlgmr.msra.gmra.mrb[16].mxu0 %v6589_v29 }
 0x6c2   :  { %v4347_v56 = vpop.f32.mrb[12].mxu0  ;;  %v4433_v57 = vpop.f32.mrb[20].mxu1 }
 0x6c3   :  { %v5193_v29 = vadd.f32 %v4347_v56, %v3283_v52  ;;  %v5197_v30 = vadd.f32 %v4433_v57, %v3291_v53  ;;  %v4349_v58 = vpop.f32.mrb[13].mxu0  ;;  %v4435_v59 = vpop.f32.mrb[21].mxu1 }
 0x6c4   :  { %v5194_v60 = vadd.f32 %v4349_v58, %v3287_v54  ;;  %v5198_v61 = vadd.f32 %v4435_v59, %v3295_v55  ;;  %v4351_v62 = vpop.f32.mrb[14].mxu0  ;;  %v4437_v63 = vpop.f32.mrb[22].mxu1 }
 0x6c5   :  { %v4528_v48 = vmul.f32 0.5, %v5193_v29  ;;  %v4530_v0 = vmul.f32 0.5, %v5197_v30  ;;  %v5195_v1 = vadd.f32 %v4351_v62, %v3283_v52  ;;  %v5199_v8 = vadd.f32 %v4437_v63, %v3291_v53  ;;  %v4353_v2 = vpop.f32.mrb[15].mxu0  ;;  %v4439_v3 = vpop.f32.mrb[23].mxu1 }
 0x6c6   :  { %v4529_v50 = vmul.f32 0.5, %v5194_v60  ;;  %v4531_v5 = vmul.f32 0.5, %v5198_v61  ;;  %v5196_v6 = vadd.f32 %v4353_v2, %v3287_v54  ;;  %v5200_v9 = vadd.f32 %v4439_v3, %v3295_v55 }
 0x6c7   :  { %6117 = vtanh.f32 %v4528_v48  ;;  %v4534_v7 = vmul.f32 0.5, %v5195_v1  ;;  %v4536_v10 = vmul.f32 0.5, %v5199_v8 }
 0x6c8   :  { %6119 = vtanh.f32 %v4530_v0  ;;  %v4535_v11 = vmul.f32 0.5, %v5196_v6  ;;  %v4537_v12 = vmul.f32 0.5, %v5200_v9 }
 0x6c9   :  { %6121 = vtanh.f32 %v4529_v50 }
 0x6ca   :  { %6123 = vtanh.f32 %v4531_v5 }
 0x6cb   :  { %6125 = vtanh.f32 %v4534_v7 }
 0x6cc   :  { %6127 = vtanh.f32 %v4536_v10 }
 0x6cd   :  { %6129 = vtanh.f32 %v4535_v11 }
 0x6ce   :  { %6131 = vtanh.f32 %v4537_v12 }
 0x6d1   :  { %v6118_v13 = vpop.eup %6117 }
 0x6d2   :  { %v6120_v14 = vpop.eup %6119  ;;  %v4552_v15 = vadd.f32 1.0, %v6118_v13 }
 0x6d3   :  { %v6122_v34 = vpop.eup %6121  ;;  %v4554_v16 = vadd.f32 1.0, %v6120_v14 }
 0x6d4   :  { %v6124_v17 = vpop.eup %6123  ;;  %v4564_v18 = vmul.f32 0.5, %v4552_v15  ;;  %v4553_v19 = vadd.f32 1.0, %v6122_v34 }
 0x6d5   :  { %v6126_v4 = vpop.eup %6125  ;;  %v4566_v20 = vmul.f32 0.5, %v4554_v16  ;;  %v4555_v21 = vadd.f32 1.0, %v6124_v17 }
 0x6d6   :  { %v6128_v51 = vpop.eup %6127  ;;  %4576 = vst [vmem:[%s6673_s13] sm:$0xff] %v4564_v18  ;;  %v4565_v22 = vmul.f32 0.5, %v4553_v19  ;;  %v4558_v28 = vadd.f32 1.0, %v6126_v4 }
 0x6d7   :  { %v6130_v49 = vpop.eup %6129  ;;  %4578 = vst [vmem:[%s6673_s13 + $0x10] sm:$0xff] %v4566_v20  ;;  %v4567_v31 = vmul.f32 0.5, %v4555_v21  ;;  %v4560_v23 = vadd.f32 1.0, %v6128_v51 }
 0x6d8   :  { %v6132_v24 = vpop.eup %6131  ;;  %4577 = vst [vmem:[%s6673_s13 + $0x8] sm:$0xff] %v4565_v22  ;;  %v4570_v25 = vmul.f32 0.5, %v4558_v28  ;;  %v4559_v26 = vadd.f32 1.0, %v6130_v49 }
 0x6d9   :  { %4579 = vst [vmem:[%s6673_s13 + $0x18] sm:$0xff] %v4567_v31  ;;  %v4572_v27 = vmul.f32 0.5, %v4560_v23  ;;  %v4561_v32 = vadd.f32 1.0, %v6132_v24 }
 0x6da   :  { %4582 = vst [vmem:[%s6673_s13 + $0x30] sm:$0xff] %v4570_v25  ;;  %v4571_v33 = vmul.f32 0.5, %v4559_v26 }
 0x6db   :  { %4584 = vst [vmem:[%s6673_s13 + $0x40] sm:$0xff] %v4572_v27  ;;  %v4573_v35 = vmul.f32 0.5, %v4561_v32 }
 0x6dc   :  { %4583 = vst [vmem:[%s6673_s13 + $0x38] sm:$0xff] %v4571_v33 }
 0x6dd   :  { %4585 = vst [vmem:[%s6673_s13 + $0x48] sm:$0xff] %v4573_v35 }
 0x742   :  { %v4519_v40 = vpop.f32.mrb[16].mxu0 }
 0x743   :  { %v5201_v41 = vadd.f32 %v4519_v40, %v3299_v38  ;;  %v4521_v42 = vpop.f32.mrb[17].mxu0 }
 0x744   :  { %v5202_v43 = vadd.f32 %v4521_v42, %v3303_v39  ;;  %v4523_v44 = vpop.f32.mrb[18].mxu0 }
 0x745   :  { %v4532_v45 = vmul.f32 0.5, %v5201_v41  ;;  %v5203_v52 = vadd.f32 %v4523_v44, %v3299_v38  ;;  %v4525_v53 = vpop.f32.mrb[19].mxu0 }
 0x746   :  { %v4533_v54 = vmul.f32 0.5, %v5202_v43  ;;  %v5204_v55 = vadd.f32 %v4525_v53, %v3303_v39 }
 0x747   :  { %6133 = vtanh.f32 %v4532_v45  ;;  %v4538_v56 = vmul.f32 0.5, %v5203_v52 }
 0x748   :  { %6135 = vtanh.f32 %v4533_v54  ;;  %v4539_v57 = vmul.f32 0.5, %v5204_v55 }
 0x749   :  { %6137 = vtanh.f32 %v4538_v56 }
 0x74a   :  { %6139 = vtanh.f32 %v4539_v57 }
 0x751   :  { %v6134_v47 = vpop.eup %6133 }
 0x752   :  { %v6136_v29 = vpop.eup %6135  ;;  %v4556_v30 = vadd.f32 1.0, %v6134_v47 }
 0x753   :  { %v6138_v46 = vpop.eup %6137  ;;  %v4557_v58 = vadd.f32 1.0, %v6136_v29 }
 0x754   :  { %v6140_v59 = vpop.eup %6139  ;;  %v4568_v60 = vmul.f32 0.5, %v4556_v30  ;;  %v4562_v61 = vadd.f32 1.0, %v6138_v46 }
 0x755   :  { %v4569_v62 = vmul.f32 0.5, %v4557_v58  ;;  %v4563_v63 = vadd.f32 1.0, %v6140_v59 }
 0x756   :  { %4580 = vst [vmem:[%s6673_s13 + $0x20] sm:$0xff] %v4568_v60  ;;  %v4574_v48 = vmul.f32 0.5, %v4562_v61 }
 0x757   :  { %4581 = vst [vmem:[%s6673_s13 + $0x28] sm:$0xff] %v4569_v62  ;;  %v4575_v0 = vmul.f32 0.5, %v4563_v63 }
 0x758   :  { %4586 = vst [vmem:[%s6673_s13 + $0x50] sm:$0xff] %v4574_v48 }
 0x759   :  { %4587 = vst [vmem:[%s6673_s13 + $0x58] sm:$0xff] %v4575_v0 }
 0x75a   :  { %4592 = vsyncpa [#allocation3], 1 }
 0x75b   :  { %4593 = vsyncpa [#allocation5], 1 }
 0x75c   :  { %4594 = vsyncpa [#allocation8], 1 }

</bundles_post_ra>
